<compile_context>
chip_gen: v7x
topology: tpu7x:2x2x1
jax: 0.10.0
libtpu: 0.0.40
codegen_flags: <defaults>
</compile_context>

<pallas_src>
import math

import jax
import jax.numpy as jnp
from jax.experimental import pallas as pl
from jax.experimental.pallas import tpu as pltpu


def _round_up(x, m):
    return ((x + m - 1) // m) * m


def ncf_neumf_kernel(uid_ref, iid_ref, tab_ref, w1_ref, b1_ref, w2_ref, b2_ref,
                     w3_ref, b3_ref, wom_ref, bo_ref, out_ref):
    """NeuMF forward for one batch tile, batch-on-lanes layout.

    Shapes (TB = batch tile size on the lane axis):
      uid_ref, iid_ref : [1, TB]  int32 (iid already offset by NU_p)
      tab_ref          : [4E, NU_p + NI_p] bf16 stacked gather table
      w1_ref           : [L1, 4E] bf16 (zero columns over the gmf rows)
      w2_ref, w3_ref   : [L2, L1], [L3, L2] bf16
      b1/b2/b3_ref     : [L*, 1] f32 ; wom_ref : [L3, 1] f32 ; bo_ref : [1, 1] f32
      out_ref          : [1, TB] f32
    """
    n_rows = tab_ref.shape[1]
    e = tab_ref.shape[0] // 4
    tb = uid_ref.shape[1]

    uid = uid_ref[...]                                     # [1, TB]
    iid = iid_ref[...]                                     # [1, TB]

    # Two-hot gather LHS: rows index the stacked [user | item] table, lanes
    # index the batch tile.  One iota pass, one compare pair, one MXU push.
    row_ids = jax.lax.broadcasted_iota(jnp.int32, (n_rows, tb), 0)
    two_hot = jnp.logical_or(row_ids == uid, row_ids == iid).astype(jnp.bfloat16)

    # Single bf16 MXU gather (f32 accumulation) -> slab [4E, TB]:
    #   rows 0:E   gmf_user, rows E:2E gmf_item * w_head_gmf (baked at pack
    #   time), rows 2E:4E [mlp_user | mlp_item].
    emb = jnp.dot(tab_ref[...], two_hot, preferred_element_type=jnp.float32)

    # GMF head term: head weight already baked into the item rows -> plain VPU
    # multiply + XLU sublane reduce (static sublane-aligned slices, E % 8 == 0).
    gmf_head = jnp.sum(emb[0:e, :] * emb[e:2 * e, :], axis=0, keepdims=True)

    # MLP: W1 is zero-padded over the gmf rows so the whole slab feeds layer 1
    # directly.  bf16 operands, f32 accumulation, f32 bias/ReLU.
    h = jnp.maximum(
        jnp.dot(w1_ref[...], emb.astype(jnp.bfloat16),
                preferred_element_type=jnp.float32) + b1_ref[...], 0.0)
    h = jnp.maximum(
        jnp.dot(w2_ref[...], h.astype(jnp.bfloat16),
                preferred_element_type=jnp.float32) + b2_ref[...], 0.0)
    h = jnp.maximum(
        jnp.dot(w3_ref[...], h.astype(jnp.bfloat16),
                preferred_element_type=jnp.float32) + b3_ref[...], 0.0)

    # MLP head term: multiply + sublane reduce instead of an N=1 MXU matmul.
    mlp_head = jnp.sum(h * wom_ref[...], axis=0, keepdims=True)

    out_ref[...] = gmf_head + mlp_head + bo_ref[...]       # [1, TB], lane-dense


def make_params(key, num_users, num_items, embedding_dim, mlp_layer_sizes):
    """Deterministic init mirroring the PyTorch module's _init_weights."""
    ks = jax.random.split(key, 8)

    def normal_emb(k, n, d):
        return 0.01 * jax.random.normal(k, (n, d), dtype=jnp.float32)

    def kaiming_uniform(k, out_f, in_f):
        # torch kaiming_uniform_ with a=1: bound = sqrt(6 / ((1+a^2)*fan_in))
        bound = math.sqrt(3.0 / in_f)
        w = jax.random.uniform(k, (out_f, in_f), dtype=jnp.float32,
                               minval=-bound, maxval=bound)
        return w.T  # stored as [in, out] for x @ W

    l1, l2, l3 = mlp_layer_sizes
    p = {
        "gmf_user_emb": normal_emb(ks[0], num_users, embedding_dim),
        "gmf_item_emb": normal_emb(ks[1], num_items, embedding_dim),
        "mlp_user_emb": normal_emb(ks[2], num_users, embedding_dim),
        "mlp_item_emb": normal_emb(ks[3], num_items, embedding_dim),
        "w1": kaiming_uniform(ks[4], l1, 2 * embedding_dim),   # [2E, l1]
        "b1": jnp.zeros((1, l1), jnp.float32),
        "w2": kaiming_uniform(ks[5], l2, l1),                  # [l1, l2]
        "b2": jnp.zeros((1, l2), jnp.float32),
        "w3": kaiming_uniform(ks[6], l3, l2),                  # [l2, l3]
        "b3": jnp.zeros((1, l3), jnp.float32),
        # NeuMF head: combined = cat(gmf_emb, mlp_feat) -> 1
        "wo": kaiming_uniform(ks[7], 1, l3 + embedding_dim),   # [E+l3, 1]
        "bo": jnp.zeros((1, 1), jnp.float32),
    }
    return p


def prepare_kernel_params(p, *, row_align=128):
    """One-time packing of parameters into kernel-friendly (bf16) layouts."""
    e = p["gmf_user_emb"].shape[1]
    nu = p["gmf_user_emb"].shape[0]
    ni = p["gmf_item_emb"].shape[0]
    nu_p = _round_up(nu, row_align)        # MXU/lane aligned contraction dim
    ni_p = _round_up(ni, row_align)
    l1 = p["w1"].shape[1]
    l2 = p["w2"].shape[1]
    l3 = p["w3"].shape[1]

    wo = p["wo"]                           # [E + l3, 1]
    wog = wo[:e, 0]                        # [E]   head weight on gmf features
    wom = wo[e:]                           # [l3, 1] head weight on mlp features

    # Stacked two-hot gather table (one MXU matmul gathers both embeddings):
    #   user rows: [gmf_u |        0         | mlp_u |   0  ]
    #   item rows: [  0   | gmf_i * w_head_g |   0   | mlp_i]
    zu = jnp.zeros((nu, e), jnp.float32)
    zi = jnp.zeros((ni, e), jnp.float32)
    urows = jnp.concatenate([p["gmf_user_emb"], zu, p["mlp_user_emb"], zu], 1)
    irows = jnp.concatenate([zi, p["gmf_item_emb"] * wog[None, :], zi,
                             p["mlp_item_emb"]], 1)
    tab = jnp.zeros((nu_p + ni_p, 4 * e), jnp.float32)
    tab = tab.at[:nu].set(urows).at[nu_p:nu_p + ni].set(irows)

    # Layer-1 weight transposed and zero-padded over the gmf rows of the slab.
    w1_t = jnp.zeros((l1, 4 * e), jnp.float32).at[:, 2 * e:].set(p["w1"].T)

    return {
        "nu_p": int(nu_p),
        "tab_t": tab.T.astype(jnp.bfloat16),        # [4E, NU_p + NI_p]
        "w1_t": w1_t.astype(jnp.bfloat16),          # [l1, 4E]
        "b1": p["b1"].T,                            # [l1, 1] f32
        "w2_t": p["w2"].T.astype(jnp.bfloat16),     # [l2, l1]
        "b2": p["b2"].T,                            # [l2, 1]
        "w3_t": p["w3"].T.astype(jnp.bfloat16),     # [l3, l2]
        "b3": p["b3"].T,                            # [l3, 1]
        "wom": wom,                                 # [l3, 1] f32
        "bo": p["bo"],                              # [1, 1]  f32
    }


def _build_ncf_call(kp, tile_b, b_pad, single_buffer_consts):
    tab_t = kp["tab_t"]

    def batch_spec(shape):
        return pl.BlockSpec(shape, lambda i: (0, i))

    def const_spec(shape):
        if single_buffer_consts:
            # Constant blocks never change index across the grid: single-buffer
            # them to halve their VMEM residency (matters on v7x's 64 MiB VMEM).
            return pl.BlockSpec(shape, lambda i: (0, 0),
                                pipeline_mode=pl.Buffered(1))
        return pl.BlockSpec(shape, lambda i: (0, 0))

    in_specs = [
        batch_spec((1, tile_b)),                     # user ids (lane-dense)
        batch_spec((1, tile_b)),                     # item ids (lane-dense)
        const_spec(tab_t.shape),
        const_spec(kp["w1_t"].shape), const_spec(kp["b1"].shape),
        const_spec(kp["w2_t"].shape), const_spec(kp["b2"].shape),
        const_spec(kp["w3_t"].shape), const_spec(kp["b3"].shape),
        const_spec(kp["wom"].shape), const_spec(kp["bo"].shape),
    ]
    out_spec = pl.BlockSpec((1, tile_b), lambda i: (0, i))

    e4, n_rows = tab_t.shape
    l1 = kp["w1_t"].shape[0]
    l2 = kp["w2_t"].shape[0]
    l3 = kp["w3_t"].shape[0]
    flops = 2 * b_pad * (n_rows * e4 + e4 * l1 + l1 * l2 + l2 * l3
                         + e4 // 4 + l3)
    bytes_accessed = (3 * b_pad * 4
                      + 2 * (n_rows * e4 + e4 * l1 + l1 * l2 + l2 * l3)
                      + 4 * (l1 + l2 + 2 * l3 + 1))
    cost = pl.CostEstimate(flops=int(flops), transcendentals=0,
                           bytes_accessed=int(bytes_accessed))

    return pl.pallas_call(
        ncf_neumf_kernel,
        out_shape=jax.ShapeDtypeStruct((1, b_pad), jnp.float32),
        grid=(b_pad // tile_b,),
        in_specs=in_specs,
        out_specs=out_spec,
        compiler_params=pltpu.CompilerParams(
            dimension_semantics=("parallel",),
            vmem_limit_bytes=32 * 1024 * 1024),
        cost_estimate=cost,
    )


def ncf_forward(kparams, user_indices, item_indices, *, max_tile_b=2048):
    """NeuMF forward (eval mode). Returns [B] f32 scores."""
    b = user_indices.shape[0]
    b_pad = _round_up(b, 128)
    tile_b = min(max_tile_b, b_pad)
    # v7x megacore: ensure >= 2 grid steps whenever the batch allows it so the
    # "parallel" batch axis can shard across both TensorCores.
    if b_pad >= 256:
        tile_b = min(tile_b, _round_up(pl.cdiv(b_pad, 2), 128))
    b_pad = _round_up(b_pad, tile_b)

    uid = jnp.zeros((1, b_pad), jnp.int32).at[0, :b].set(
        user_indices.astype(jnp.int32))
    iid = jnp.zeros((1, b_pad), jnp.int32).at[0, :b].set(
        item_indices.astype(jnp.int32)) + kparams["nu_p"]   # shift into item rows

    args = (uid, iid, kparams["tab_t"], kparams["w1_t"], kparams["b1"],
            kparams["w2_t"], kparams["b2"], kparams["w3_t"], kparams["b3"],
            kparams["wom"], kparams["bo"])
    try:
        out = _build_ncf_call(kparams, tile_b, b_pad, True)(*args)
    except Exception:
        # pl.Buffered(1) / pipeline_mode not supported by this jax build:
        # fall back to default (double-buffered) constant blocks.
        out = _build_ncf_call(kparams, tile_b, b_pad, False)(*args)

    # .view(-1) equivalent; drop batch padding.
    return out[0, :b]


def ncf_reference(params, u, i):
    """Pure-JAX f32 reference (eval-mode NeuMF)."""
    gmf_emb = (jnp.take(params["gmf_user_emb"], u, axis=0)
               * jnp.take(params["gmf_item_emb"], i, axis=0))
    v = jnp.concatenate([jnp.take(params["mlp_user_emb"], u, axis=0),
                         jnp.take(params["mlp_item_emb"], i, axis=0)], -1)
    v = jnp.maximum(v @ params["w1"] + params["b1"], 0.0)
    v = jnp.maximum(v @ params["w2"] + params["b2"], 0.0)
    v = jnp.maximum(v @ params["w3"] + params["b3"], 0.0)
    comb = jnp.concatenate([gmf_emb, v], -1)
    return (comb @ params["wo"] + params["bo"]).reshape(-1)


if __name__ == "__main__":
    num_users, num_items = 100, 200
    embedding_dim = 32
    mlp_layer_sizes = [64, 32, 16]

    key = jax.random.PRNGKey(0)
    pkey, dkey = jax.random.split(key)
    params = make_params(pkey, num_users, num_items, embedding_dim,
                         mlp_layer_sizes)
    kparams = prepare_kernel_params(params)

    # batch=8 exercises grid=(1,); batch=300 exercises grid=(2,) + padded tail.
    for batch in (8, 300):
        ukey, ikey = jax.random.split(jax.random.fold_in(dkey, batch))
        user_indices = jax.random.randint(ukey, (batch,), 0, num_users,
                                          dtype=jnp.int32)
        item_indices = jax.random.randint(ikey, (batch,), 0, num_items,
                                          dtype=jnp.int32)

        out = jax.block_until_ready(
            ncf_forward(kparams, user_indices, item_indices))
        assert out.shape == (batch,)

        expected = ncf_reference(params, user_indices, item_indices)
        # bf16 MXU operands (f32 accumulation) -> relaxed tolerance vs f32 ref.
        assert jnp.allclose(out, expected, atol=4e-4, rtol=3e-2), (
            float(jnp.max(jnp.abs(out - expected))))

    print("KERNEL_OK")
</pallas_src>

<mosaic_0001>
module attributes {stable_mosaic.version = 11 : i64} {
  func.func @ncf_neumf_kernel(%arg0: i32, %arg1: memref<1x128xi32, #tpu.memory_space<vmem>>, %arg2: memref<1x128xi32, #tpu.memory_space<vmem>>, %arg3: memref<128x384xbf16, #tpu.memory_space<vmem>>, %arg4: memref<64x128xbf16, #tpu.memory_space<vmem>>, %arg5: memref<64x1xf32, #tpu.memory_space<vmem>>, %arg6: memref<32x64xbf16, #tpu.memory_space<vmem>>, %arg7: memref<32x1xf32, #tpu.memory_space<vmem>>, %arg8: memref<16x32xbf16, #tpu.memory_space<vmem>>, %arg9: memref<16x1xf32, #tpu.memory_space<vmem>>, %arg10: memref<16x1xf32, #tpu.memory_space<vmem>>, %arg11: memref<1x1xf32, #tpu.memory_space<vmem>>, %arg12: memref<1x128xf32, #tpu.memory_space<vmem>>) attributes {dimension_semantics = [#tpu.dimension_semantics<parallel>], iteration_bounds = array<i64: 1>, scalar_prefetch = 0 : i64, scratch_operands = 0 : i64, tpu.core_type = #tpu.core_type<tc>, window_params = [{transform_indices = @transform_0, window_bounds = array<i64: 1, 128>}, {transform_indices = @transform_1, window_bounds = array<i64: 1, 128>}, {pipeline_mode = #tpu.pipeline_mode<synchronous>, transform_indices = @transform_2, window_bounds = array<i64: 128, 384>}, {pipeline_mode = #tpu.pipeline_mode<synchronous>, transform_indices = @transform_3, window_bounds = array<i64: 64, 128>}, {pipeline_mode = #tpu.pipeline_mode<synchronous>, transform_indices = @transform_4, window_bounds = array<i64: 64, 1>}, {pipeline_mode = #tpu.pipeline_mode<synchronous>, transform_indices = @transform_5, window_bounds = array<i64: 32, 64>}, {pipeline_mode = #tpu.pipeline_mode<synchronous>, transform_indices = @transform_6, window_bounds = array<i64: 32, 1>}, {pipeline_mode = #tpu.pipeline_mode<synchronous>, transform_indices = @transform_7, window_bounds = array<i64: 16, 32>}, {pipeline_mode = #tpu.pipeline_mode<synchronous>, transform_indices = @transform_8, window_bounds = array<i64: 16, 1>}, {pipeline_mode = #tpu.pipeline_mode<synchronous>, transform_indices = @transform_9, window_bounds = array<i64: 16, 1>}, {pipeline_mode = #tpu.pipeline_mode<synchronous>, transform_indices = @transform_10, window_bounds = array<i64: 1, 1>}, {transform_indices = @transform_11, window_bounds = array<i64: 1, 128>}]} {
    %c0 = arith.constant 0 : index
    %c0_0 = arith.constant 0 : index
    %0 = vector.load %arg1[%c0, %c0_0] : memref<1x128xi32, #tpu.memory_space<vmem>>, vector<1x128xi32>
    %c0_1 = arith.constant 0 : index
    %c0_2 = arith.constant 0 : index
    %1 = vector.load %arg2[%c0_1, %c0_2] : memref<1x128xi32, #tpu.memory_space<vmem>>, vector<1x128xi32>
    %2 = tpu.iota {dimensions = array<i32: 0>} : vector<384x128xi32>
    %3 = vector.broadcast %0 : vector<1x128xi32> to vector<384x128xi32>
    %4 = arith.cmpi eq, %2, %3 : vector<384x128xi32>
    %5 = vector.broadcast %1 : vector<1x128xi32> to vector<384x128xi32>
    %6 = arith.cmpi eq, %2, %5 : vector<384x128xi32>
    %7 = arith.ori %4, %6 : vector<384x128xi1>
    %8 = arith.extui %7 : vector<384x128xi1> to vector<384x128xi32>
    %9 = arith.sitofp %8 : vector<384x128xi32> to vector<384x128xf32>
    %10 = arith.truncf %9 : vector<384x128xf32> to vector<384x128xbf16>
    %c0_3 = arith.constant 0 : index
    %c0_4 = arith.constant 0 : index
    %11 = vector.load %arg3[%c0_3, %c0_4] : memref<128x384xbf16, #tpu.memory_space<vmem>>, vector<128x384xbf16>
    %cst = arith.constant dense<0.000000e+00> : vector<128x128xf32>
    %12 = tpu.matmul %11, %10, %cst {dimension_numbers = #tpu.dot_dimension_numbers<[1], [0], [0], [1], [0, 0, 1, 1], [], []>} : vector<128x384xbf16>, vector<384x128xbf16>, vector<128x128xf32> -> vector<128x128xf32>
    %13 = vector.extract_strided_slice %12 {offsets = [0, 0], sizes = [32, 128], strides = [1, 1]} : vector<128x128xf32> to vector<32x128xf32>
    %14 = vector.extract_strided_slice %12 {offsets = [32, 0], sizes = [32, 128], strides = [1, 1]} : vector<128x128xf32> to vector<32x128xf32>
    %15 = arith.mulf %13, %14 : vector<32x128xf32>
    %cst_5 = arith.constant dense<0.000000e+00> : vector<128xf32>
    %16 = vector.multi_reduction <add>, %15, %cst_5 [0] : vector<32x128xf32> to vector<128xf32>
    %17 = vector.shape_cast %16 : vector<128xf32> to vector<1x128xf32>
    %c0_6 = arith.constant 0 : index
    %c0_7 = arith.constant 0 : index
    %18 = vector.load %arg4[%c0_6, %c0_7] : memref<64x128xbf16, #tpu.memory_space<vmem>>, vector<64x128xbf16>
    %19 = arith.truncf %12 : vector<128x128xf32> to vector<128x128xbf16>
    %cst_8 = arith.constant dense<0.000000e+00> : vector<64x128xf32>
    %20 = tpu.matmul %18, %19, %cst_8 {dimension_numbers = #tpu.dot_dimension_numbers<[1], [0], [0], [1], [0, 0, 1, 1], [], []>} : vector<64x128xbf16>, vector<128x128xbf16>, vector<64x128xf32> -> vector<64x128xf32>
    %c0_9 = arith.constant 0 : index
    %c0_10 = arith.constant 0 : index
    %21 = vector.load %arg5[%c0_9, %c0_10] : memref<64x1xf32, #tpu.memory_space<vmem>>, vector<64x1xf32>
    %22 = vector.broadcast %21 : vector<64x1xf32> to vector<64x128xf32>
    %23 = arith.addf %20, %22 : vector<64x128xf32>
    %cst_11 = arith.constant 0.000000e+00 : f32
    %24 = vector.broadcast %cst_11 : f32 to vector<64x128xf32>
    %25 = arith.maximumf %23, %24 : vector<64x128xf32>
    %c0_12 = arith.constant 0 : index
    %c0_13 = arith.constant 0 : index
    %26 = vector.load %arg6[%c0_12, %c0_13] : memref<32x64xbf16, #tpu.memory_space<vmem>>, vector<32x64xbf16>
    %27 = arith.truncf %25 : vector<64x128xf32> to vector<64x128xbf16>
    %cst_14 = arith.constant dense<0.000000e+00> : vector<32x128xf32>
    %28 = tpu.matmul %26, %27, %cst_14 {dimension_numbers = #tpu.dot_dimension_numbers<[1], [0], [0], [1], [0, 0, 1, 1], [], []>} : vector<32x64xbf16>, vector<64x128xbf16>, vector<32x128xf32> -> vector<32x128xf32>
    %c0_15 = arith.constant 0 : index
    %c0_16 = arith.constant 0 : index
    %29 = vector.load %arg7[%c0_15, %c0_16] : memref<32x1xf32, #tpu.memory_space<vmem>>, vector<32x1xf32>
    %30 = vector.broadcast %29 : vector<32x1xf32> to vector<32x128xf32>
    %31 = arith.addf %28, %30 : vector<32x128xf32>
    %cst_17 = arith.constant 0.000000e+00 : f32
    %32 = vector.broadcast %cst_17 : f32 to vector<32x128xf32>
    %33 = arith.maximumf %31, %32 : vector<32x128xf32>
    %c0_18 = arith.constant 0 : index
    %c0_19 = arith.constant 0 : index
    %34 = vector.load %arg8[%c0_18, %c0_19] : memref<16x32xbf16, #tpu.memory_space<vmem>>, vector<16x32xbf16>
    %35 = arith.truncf %33 : vector<32x128xf32> to vector<32x128xbf16>
    %cst_20 = arith.constant dense<0.000000e+00> : vector<16x128xf32>
    %36 = tpu.matmul %34, %35, %cst_20 {dimension_numbers = #tpu.dot_dimension_numbers<[1], [0], [0], [1], [0, 0, 1, 1], [], []>} : vector<16x32xbf16>, vector<32x128xbf16>, vector<16x128xf32> -> vector<16x128xf32>
    %c0_21 = arith.constant 0 : index
    %c0_22 = arith.constant 0 : index
    %37 = vector.load %arg9[%c0_21, %c0_22] : memref<16x1xf32, #tpu.memory_space<vmem>>, vector<16x1xf32>
    %38 = vector.broadcast %37 : vector<16x1xf32> to vector<16x128xf32>
    %39 = arith.addf %36, %38 : vector<16x128xf32>
    %cst_23 = arith.constant 0.000000e+00 : f32
    %40 = vector.broadcast %cst_23 : f32 to vector<16x128xf32>
    %41 = arith.maximumf %39, %40 : vector<16x128xf32>
    %c0_24 = arith.constant 0 : index
    %c0_25 = arith.constant 0 : index
    %42 = vector.load %arg10[%c0_24, %c0_25] : memref<16x1xf32, #tpu.memory_space<vmem>>, vector<16x1xf32>
    %43 = vector.broadcast %42 : vector<16x1xf32> to vector<16x128xf32>
    %44 = arith.mulf %41, %43 : vector<16x128xf32>
    %cst_26 = arith.constant dense<0.000000e+00> : vector<128xf32>
    %45 = vector.multi_reduction <add>, %44, %cst_26 [0] : vector<16x128xf32> to vector<128xf32>
    %46 = vector.shape_cast %45 : vector<128xf32> to vector<1x128xf32>
    %47 = arith.addf %17, %46 : vector<1x128xf32>
    %c0_27 = arith.constant 0 : index
    %c0_28 = arith.constant 0 : index
    %48 = vector.load %arg11[%c0_27, %c0_28] : memref<1x1xf32, #tpu.memory_space<vmem>>, vector<1x1xf32>
    %49 = vector.broadcast %48 : vector<1x1xf32> to vector<1x128xf32>
    %50 = arith.addf %47, %49 : vector<1x128xf32>
    %c0_29 = arith.constant 0 : index
    %c0_30 = arith.constant 0 : index
    %51 = vector.load %arg12[%c0_29, %c0_30] : memref<1x128xf32, #tpu.memory_space<vmem>>, vector<1x128xf32>
    tpu.vector_store %arg12[%c0_29, %c0_30], %50 {strides = array<i32>} : memref<1x128xf32, #tpu.memory_space<vmem>>, vector<1x128xf32>,
    return
  }
  func.func @transform_0(%arg0: i32) -> (i32, i32) {
    %c0_i32 = arith.constant 0 : i32
    %c0_i32_0 = arith.constant 0 : i32
    return %c0_i32, %arg0 : i32, i32
  }
  func.func @transform_1(%arg0: i32) -> (i32, i32) {
    %c0_i32 = arith.constant 0 : i32
    %c0_i32_0 = arith.constant 0 : i32
    return %c0_i32, %arg0 : i32, i32
  }
  func.func @transform_2(%arg0: i32) -> (i32, i32) {
    %c0_i32 = arith.constant 0 : i32
    %c0_i32_0 = arith.constant 0 : i32
    %c0_i32_1 = arith.constant 0 : i32
    return %c0_i32, %c0_i32_0 : i32, i32
  }
  func.func @transform_3(%arg0: i32) -> (i32, i32) {
    %c0_i32 = arith.constant 0 : i32
    %c0_i32_0 = arith.constant 0 : i32
    %c0_i32_1 = arith.constant 0 : i32
    return %c0_i32, %c0_i32_0 : i32, i32
  }
  func.func @transform_4(%arg0: i32) -> (i32, i32) {
    %c0_i32 = arith.constant 0 : i32
    %c0_i32_0 = arith.constant 0 : i32
    %c0_i32_1 = arith.constant 0 : i32
    return %c0_i32, %c0_i32_0 : i32, i32
  }
  func.func @transform_5(%arg0: i32) -> (i32, i32) {
    %c0_i32 = arith.constant 0 : i32
    %c0_i32_0 = arith.constant 0 : i32
    %c0_i32_1 = arith.constant 0 : i32
    return %c0_i32, %c0_i32_0 : i32, i32
  }
  func.func @transform_6(%arg0: i32) -> (i32, i32) {
    %c0_i32 = arith.constant 0 : i32
    %c0_i32_0 = arith.constant 0 : i32
    %c0_i32_1 = arith.constant 0 : i32
    return %c0_i32, %c0_i32_0 : i32, i32
  }
  func.func @transform_7(%arg0: i32) -> (i32, i32) {
    %c0_i32 = arith.constant 0 : i32
    %c0_i32_0 = arith.constant 0 : i32
    %c0_i32_1 = arith.constant 0 : i32
    return %c0_i32, %c0_i32_0 : i32, i32
  }
  func.func @transform_8(%arg0: i32) -> (i32, i32) {
    %c0_i32 = arith.constant 0 : i32
    %c0_i32_0 = arith.constant 0 : i32
    %c0_i32_1 = arith.constant 0 : i32
    return %c0_i32, %c0_i32_0 : i32, i32
  }
  func.func @transform_9(%arg0: i32) -> (i32, i32) {
    %c0_i32 = arith.constant 0 : i32
    %c0_i32_0 = arith.constant 0 : i32
    %c0_i32_1 = arith.constant 0 : i32
    return %c0_i32, %c0_i32_0 : i32, i32
  }
  func.func @transform_10(%arg0: i32) -> (i32, i32) {
    %c0_i32 = arith.constant 0 : i32
    %c0_i32_0 = arith.constant 0 : i32
    %c0_i32_1 = arith.constant 0 : i32
    return %c0_i32, %c0_i32_0 : i32, i32
  }
  func.func @transform_11(%arg0: i32) -> (i32, i32) {
    %c0_i32 = arith.constant 0 : i32
    %c0_i32_0 = arith.constant 0 : i32
    return %c0_i32, %arg0 : i32, i32
  }
}

module attributes {stable_mosaic.version = 11 : i64} {
  func.func @ncf_neumf_kernel(%arg0: i32, %arg1: memref<1x128xi32, #tpu.memory_space<vmem>>, %arg2: memref<1x128xi32, #tpu.memory_space<vmem>>, %arg3: memref<128x384xbf16, #tpu.memory_space<vmem>>, %arg4: memref<64x128xbf16, #tpu.memory_space<vmem>>, %arg5: memref<64x1xf32, #tpu.memory_space<vmem>>, %arg6: memref<32x64xbf16, #tpu.memory_space<vmem>>, %arg7: memref<32x1xf32, #tpu.memory_space<vmem>>, %arg8: memref<16x32xbf16, #tpu.memory_space<vmem>>, %arg9: memref<16x1xf32, #tpu.memory_space<vmem>>, %arg10: memref<16x1xf32, #tpu.memory_space<vmem>>, %arg11: memref<1x1xf32, #tpu.memory_space<vmem>>, %arg12: memref<1x128xf32, #tpu.memory_space<vmem>>) attributes {dimension_semantics = [#tpu.dimension_semantics<parallel>], iteration_bounds = array<i64: 1>, scalar_prefetch = 0 : i64, scratch_operands = 0 : i64, tpu.core_type = #tpu.core_type<tc>, window_params = [{transform_indices = @transform_0, window_bounds = array<i64: 1, 128>}, {transform_indices = @transform_1, window_bounds = array<i64: 1, 128>}, {pipeline_mode = #tpu.pipeline_mode<synchronous>, transform_indices = @transform_2, window_bounds = array<i64: 128, 384>}, {pipeline_mode = #tpu.pipeline_mode<synchronous>, transform_indices = @transform_3, window_bounds = array<i64: 64, 128>}, {pipeline_mode = #tpu.pipeline_mode<synchronous>, transform_indices = @transform_4, window_bounds = array<i64: 64, 1>}, {pipeline_mode = #tpu.pipeline_mode<synchronous>, transform_indices = @transform_5, window_bounds = array<i64: 32, 64>}, {pipeline_mode = #tpu.pipeline_mode<synchronous>, transform_indices = @transform_6, window_bounds = array<i64: 32, 1>}, {pipeline_mode = #tpu.pipeline_mode<synchronous>, transform_indices = @transform_7, window_bounds = array<i64: 16, 32>}, {pipeline_mode = #tpu.pipeline_mode<synchronous>, transform_indices = @transform_8, window_bounds = array<i64: 16, 1>}, {pipeline_mode = #tpu.pipeline_mode<synchronous>, transform_indices = @transform_9, window_bounds = array<i64: 16, 1>}, {pipeline_mode = #tpu.pipeline_mode<synchronous>, transform_indices = @transform_10, window_bounds = array<i64: 1, 1>}, {transform_indices = @transform_11, window_bounds = array<i64: 1, 128>}]} {
    %c0 = arith.constant 0 : index
    %c0_0 = arith.constant 0 : index
    %0 = vector.load %arg1[%c0, %c0_0] : memref<1x128xi32, #tpu.memory_space<vmem>>, vector<1x128xi32>
    %c0_1 = arith.constant 0 : index
    %c0_2 = arith.constant 0 : index
    %1 = vector.load %arg2[%c0_1, %c0_2] : memref<1x128xi32, #tpu.memory_space<vmem>>, vector<1x128xi32>
    %2 = tpu.iota {dimensions = array<i32: 0>} : vector<384x128xi32>
    %3 = vector.broadcast %0 : vector<1x128xi32> to vector<384x128xi32>
    %4 = arith.cmpi eq, %2, %3 : vector<384x128xi32>
    %5 = vector.broadcast %1 : vector<1x128xi32> to vector<384x128xi32>
    %6 = arith.cmpi eq, %2, %5 : vector<384x128xi32>
    %7 = arith.ori %4, %6 : vector<384x128xi1>
    %8 = arith.extui %7 : vector<384x128xi1> to vector<384x128xi32>
    %9 = arith.sitofp %8 : vector<384x128xi32> to vector<384x128xf32>
    %10 = arith.truncf %9 : vector<384x128xf32> to vector<384x128xbf16>
    %c0_3 = arith.constant 0 : index
    %c0_4 = arith.constant 0 : index
    %11 = vector.load %arg3[%c0_3, %c0_4] : memref<128x384xbf16, #tpu.memory_space<vmem>>, vector<128x384xbf16>
    %cst = arith.constant dense<0.000000e+00> : vector<128x128xf32>
    %12 = tpu.matmul %11, %10, %cst {dimension_numbers = #tpu.dot_dimension_numbers<[1], [0], [0], [1], [0, 0, 1, 1], [], []>} : vector<128x384xbf16>, vector<384x128xbf16>, vector<128x128xf32> -> vector<128x128xf32>
    %13 = vector.extract_strided_slice %12 {offsets = [0, 0], sizes = [32, 128], strides = [1, 1]} : vector<128x128xf32> to vector<32x128xf32>
    %14 = vector.extract_strided_slice %12 {offsets = [32, 0], sizes = [32, 128], strides = [1, 1]} : vector<128x128xf32> to vector<32x128xf32>
    %15 = arith.mulf %13, %14 : vector<32x128xf32>
    %cst_5 = arith.constant dense<0.000000e+00> : vector<128xf32>
    %16 = vector.multi_reduction <add>, %15, %cst_5 [0] : vector<32x128xf32> to vector<128xf32>
    %17 = vector.shape_cast %16 : vector<128xf32> to vector<1x128xf32>
    %c0_6 = arith.constant 0 : index
    %c0_7 = arith.constant 0 : index
    %18 = vector.load %arg4[%c0_6, %c0_7] : memref<64x128xbf16, #tpu.memory_space<vmem>>, vector<64x128xbf16>
    %19 = arith.truncf %12 : vector<128x128xf32> to vector<128x128xbf16>
    %cst_8 = arith.constant dense<0.000000e+00> : vector<64x128xf32>
    %20 = tpu.matmul %18, %19, %cst_8 {dimension_numbers = #tpu.dot_dimension_numbers<[1], [0], [0], [1], [0, 0, 1, 1], [], []>} : vector<64x128xbf16>, vector<128x128xbf16>, vector<64x128xf32> -> vector<64x128xf32>
    %c0_9 = arith.constant 0 : index
    %c0_10 = arith.constant 0 : index
    %21 = vector.load %arg5[%c0_9, %c0_10] : memref<64x1xf32, #tpu.memory_space<vmem>>, vector<64x1xf32>
    %22 = vector.broadcast %21 : vector<64x1xf32> to vector<64x128xf32>
    %23 = arith.addf %20, %22 : vector<64x128xf32>
    %cst_11 = arith.constant 0.000000e+00 : f32
    %24 = vector.broadcast %cst_11 : f32 to vector<64x128xf32>
    %25 = arith.maximumf %23, %24 : vector<64x128xf32>
    %c0_12 = arith.constant 0 : index
    %c0_13 = arith.constant 0 : index
    %26 = vector.load %arg6[%c0_12, %c0_13] : memref<32x64xbf16, #tpu.memory_space<vmem>>, vector<32x64xbf16>
    %27 = arith.truncf %25 : vector<64x128xf32> to vector<64x128xbf16>
    %cst_14 = arith.constant dense<0.000000e+00> : vector<32x128xf32>
    %28 = tpu.matmul %26, %27, %cst_14 {dimension_numbers = #tpu.dot_dimension_numbers<[1], [0], [0], [1], [0, 0, 1, 1], [], []>} : vector<32x64xbf16>, vector<64x128xbf16>, vector<32x128xf32> -> vector<32x128xf32>
    %c0_15 = arith.constant 0 : index
    %c0_16 = arith.constant 0 : index
    %29 = vector.load %arg7[%c0_15, %c0_16] : memref<32x1xf32, #tpu.memory_space<vmem>>, vector<32x1xf32>
    %30 = vector.broadcast %29 : vector<32x1xf32> to vector<32x128xf32>
    %31 = arith.addf %28, %30 : vector<32x128xf32>
    %cst_17 = arith.constant 0.000000e+00 : f32
    %32 = vector.broadcast %cst_17 : f32 to vector<32x128xf32>
    %33 = arith.maximumf %31, %32 : vector<32x128xf32>
    %c0_18 = arith.constant 0 : index
    %c0_19 = arith.constant 0 : index
    %34 = vector.load %arg8[%c0_18, %c0_19] : memref<16x32xbf16, #tpu.memory_space<vmem>>, vector<16x32xbf16>
    %35 = arith.truncf %33 : vector<32x128xf32> to vector<32x128xbf16>
    %cst_20 = arith.constant dense<0.000000e+00> : vector<16x128xf32>
    %36 = tpu.matmul %34, %35, %cst_20 {dimension_numbers = #tpu.dot_dimension_numbers<[1], [0], [0], [1], [0, 0, 1, 1], [], []>} : vector<16x32xbf16>, vector<32x128xbf16>, vector<16x128xf32> -> vector<16x128xf32>
    %c0_21 = arith.constant 0 : index
    %c0_22 = arith.constant 0 : index
    %37 = vector.load %arg9[%c0_21, %c0_22] : memref<16x1xf32, #tpu.memory_space<vmem>>, vector<16x1xf32>
    %38 = vector.broadcast %37 : vector<16x1xf32> to vector<16x128xf32>
    %39 = arith.addf %36, %38 : vector<16x128xf32>
    %cst_23 = arith.constant 0.000000e+00 : f32
    %40 = vector.broadcast %cst_23 : f32 to vector<16x128xf32>
    %41 = arith.maximumf %39, %40 : vector<16x128xf32>
    %c0_24 = arith.constant 0 : index
    %c0_25 = arith.constant 0 : index
    %42 = vector.load %arg10[%c0_24, %c0_25] : memref<16x1xf32, #tpu.memory_space<vmem>>, vector<16x1xf32>
    %43 = vector.broadcast %42 : vector<16x1xf32> to vector<16x128xf32>
    %44 = arith.mulf %41, %43 : vector<16x128xf32>
    %cst_26 = arith.constant dense<0.000000e+00> : vector<128xf32>
    %45 = vector.multi_reduction <add>, %44, %cst_26 [0] : vector<16x128xf32> to vector<128xf32>
    %46 = vector.shape_cast %45 : vector<128xf32> to vector<1x128xf32>
    %47 = arith.addf %17, %46 : vector<1x128xf32>
    %c0_27 = arith.constant 0 : index
    %c0_28 = arith.constant 0 : index
    %48 = vector.load %arg11[%c0_27, %c0_28] : memref<1x1xf32, #tpu.memory_space<vmem>>, vector<1x1xf32>
    %49 = vector.broadcast %48 : vector<1x1xf32> to vector<1x128xf32>
    %50 = arith.addf %47, %49 : vector<1x128xf32>
    %c0_29 = arith.constant 0 : index
    %c0_30 = arith.constant 0 : index
    %51 = vector.load %arg12[%c0_29, %c0_30] : memref<1x128xf32, #tpu.memory_space<vmem>>, vector<1x128xf32>
    tpu.vector_store %arg12[%c0_29, %c0_30], %50 {strides = array<i32>} : memref<1x128xf32, #tpu.memory_space<vmem>>, vector<1x128xf32>,
    return
  }
  func.func @transform_0(%arg0: i32) -> (i32, i32) {
    %c0_i32 = arith.constant 0 : i32
    %c0_i32_0 = arith.constant 0 : i32
    return %c0_i32, %arg0 : i32, i32
  }
  func.func @transform_1(%arg0: i32) -> (i32, i32) {
    %c0_i32 = arith.constant 0 : i32
    %c0_i32_0 = arith.constant 0 : i32
    return %c0_i32, %arg0 : i32, i32
  }
  func.func @transform_2(%arg0: i32) -> (i32, i32) {
    %c0_i32 = arith.constant 0 : i32
    %c0_i32_0 = arith.constant 0 : i32
    %c0_i32_1 = arith.constant 0 : i32
    return %c0_i32, %c0_i32_0 : i32, i32
  }
  func.func @transform_3(%arg0: i32) -> (i32, i32) {
    %c0_i32 = arith.constant 0 : i32
    %c0_i32_0 = arith.constant 0 : i32
    %c0_i32_1 = arith.constant 0 : i32
    return %c0_i32, %c0_i32_0 : i32, i32
  }
  func.func @transform_4(%arg0: i32) -> (i32, i32) {
    %c0_i32 = arith.constant 0 : i32
    %c0_i32_0 = arith.constant 0 : i32
    %c0_i32_1 = arith.constant 0 : i32
    return %c0_i32, %c0_i32_0 : i32, i32
  }
  func.func @transform_5(%arg0: i32) -> (i32, i32) {
    %c0_i32 = arith.constant 0 : i32
    %c0_i32_0 = arith.constant 0 : i32
    %c0_i32_1 = arith.constant 0 : i32
    return %c0_i32, %c0_i32_0 : i32, i32
  }
  func.func @transform_6(%arg0: i32) -> (i32, i32) {
    %c0_i32 = arith.constant 0 : i32
    %c0_i32_0 = arith.constant 0 : i32
    %c0_i32_1 = arith.constant 0 : i32
    return %c0_i32, %c0_i32_0 : i32, i32
  }
  func.func @transform_7(%arg0: i32) -> (i32, i32) {
    %c0_i32 = arith.constant 0 : i32
    %c0_i32_0 = arith.constant 0 : i32
    %c0_i32_1 = arith.constant 0 : i32
    return %c0_i32, %c0_i32_0 : i32, i32
  }
  func.func @transform_8(%arg0: i32) -> (i32, i32) {
    %c0_i32 = arith.constant 0 : i32
    %c0_i32_0 = arith.constant 0 : i32
    %c0_i32_1 = arith.constant 0 : i32
    return %c0_i32, %c0_i32_0 : i32, i32
  }
  func.func @transform_9(%arg0: i32) -> (i32, i32) {
    %c0_i32 = arith.constant 0 : i32
    %c0_i32_0 = arith.constant 0 : i32
    %c0_i32_1 = arith.constant 0 : i32
    return %c0_i32, %c0_i32_0 : i32, i32
  }
  func.func @transform_10(%arg0: i32) -> (i32, i32) {
    %c0_i32 = arith.constant 0 : i32
    %c0_i32_0 = arith.constant 0 : i32
    %c0_i32_1 = arith.constant 0 : i32
    return %c0_i32, %c0_i32_0 : i32, i32
  }
  func.func @transform_11(%arg0: i32) -> (i32, i32) {
    %c0_i32 = arith.constant 0 : i32
    %c0_i32_0 = arith.constant 0 : i32
    return %c0_i32, %arg0 : i32, i32
  }
}

</mosaic_0001>

<bundles_post_ra>
// kernel: tpu_custom_call.1
= control target key start
LH: loop header
LB: loop body
LE: loop exit
PB: predicated region body
PF: predicated region fallthrough
CT: control target
= control target key end

     0   :  { %s1892_s0 = inlined_call_operand.vmem [shape: s32[1,128], index: 0, kind: input, shape index: {}]   ;;  %s1893_s1 = inlined_call_operand.vmem [shape: s32[1,128], index: 1, kind: input, shape index: {}]   ;;  %s1894_s2 = inlined_call_operand.hbm [shape: bf16[128,384], index: 2, kind: input, shape index: {}]   ;;  %s1895_s3 = inlined_call_operand.vmem [shape: bf16[64,128], index: 3, kind: input, shape index: {}]   ;;  %s1896_s4 = inlined_call_operand.vmem [shape: f32[64,1], index: 4, kind: input, shape index: {}]   ;;  %s1897_s5 = inlined_call_operand.vmem [shape: bf16[32,64], index: 5, kind: input, shape index: {}]   ;;  %s1898_s6 = inlined_call_operand.vmem [shape: f32[32,1], index: 6, kind: input, shape index: {}]   ;;  %s1899_s7 = inlined_call_operand.vmem [shape: bf16[16,32], index: 7, kind: input, shape index: {}]   ;;  %s1900_s8 = inlined_call_operand.vmem [shape: f32[16,1], index: 8, kind: input, shape index: {}]   ;;  %s1901_s9 = inlined_call_operand.vmem [shape: f32[16,1], index: 9, kind: input, shape index: {}]   ;;  %s1902_s10 = inlined_call_operand.<no memory space> [shape: f32[1,1], index: 10, kind: input, shape index: {}]   ;;  %s1903_s11 = inlined_call_operand.hbm [shape: f32[1,128], index: 11, kind: output, shape index: {}]  }
   0x1   :  { %v16_v0 = vstv %s1902_s10 }
   0x2   :  { %17 = vst [vmem:[#allocation2] sm:$0x1] %v16_v0 }
   0x3   :  { %18 = vsyncpa [#allocation4], 0 }
   0x4   :  { %19 = vsyncpa [#allocation5], 0  ;;  %s1532_s19 = smov [#allocation3]   ;;  %s1484_s23 = scalar_lea.hbm %s1894_s2, 3072 }
   0x5   :  { %s29_s20 = sshll.u32 %s1532_s19, 4  ;;  %p1485_p0 = scmp.ne.s32.totalorder %s1894_s2, %s1484_s23  ;;  %s30_s20 = int_to_ptr.vmem [resolvable:$true] %s29_s20 }
   0x6   :  { %p1488_p1 = scmp.lt.u32.totalorder %s1484_s23, %s1894_s2 }
   0x8   :  { %p1490_p2 = pnand %p1488_p1, %p1485_p0 }
   0xa   :  { %1493 = shalt.err (!%p1490_p2)
}
   0xb   :  { %s1494_s10 = scalar_lea.vmem %s30_s20, 3072  ;;  %p1499_p4 = scmp.lt.s32.totalorder %s30_s20, %s30_s20 }
   0xc   :  { %p1495_p3 = scmp.ne.s32.totalorder %s30_s20, %s1494_s10  ;;  %p1500_p5 = scmp.lt.s32.totalorder %s1494_s10, %s1494_s10 }
   0xe   :  { %p1501_p6 = por %p1500_p5, %p1499_p4 }
  0x10   :  { %p1502_p7 = pnand %p1501_p6, %p1495_p3 }
  0x12   :  { %1505 = shalt.err (!%p1502_p7)
}
  0x13   :  { %s1533_s28 = smov 192   ;;  %s1534_s29 = smov 12  }
  0x14   :  { %35 = dma.hbm_to_vmem [thread:$0]  %s1894_s2, 3072, %s30_s20, [#allocation4], %s1533_s28, %s1533_s28, %s1534_s29  }
  0x15   :  { %1528 = dma.done.wait [#allocation4], 3072  }
  0x16   :  { %1529 = vsyncadd [#allocation4], 4294964224  ;;  %v58_v1 = vlaneseq  ;;  %v1623_v6 = vld [vmem:[%s1892_s0] ss:$0 sm:$0xff]  ;;  %v1447_v10 = vld [vmem:[#allocation3 + $0x4] ss:$12 sps:$4 sm:$0xff]  }
  0x17   :  { %v1628_v7 = vld [vmem:[%s1893_s1] ss:$0 sm:$0xff]  ;;  %v1448_v11 = vld [vmem:[#allocation3 + $0x8] ss:$12 sps:$4 sm:$0xff]   ;;  %571 = vmatprep.mubr.bf16.mxu0 %v1447_v10  ;;  %v1535_v13 = vmov 1.0|1.0  }
  0x18   :  { %v1615_v2 = vshrl.u32 %v58_v1, 7  ;;  %1375 = vmatprep.mubr.bf16.mxu1 %v1448_v11  ;;  %v1445_v55 = vld [vmem:[#allocation3] ss:$12 sps:$4 sm:$0xff]   ;;  %v1450_v56 = vld [vmem:[#allocation3 + $0x1c] ss:$12 sps:$4 sm:$0xff]  }
  0x19   :  { %v1449_v57 = vld [vmem:[#allocation3 + $0x20] ss:$12 sps:$4 sm:$0xff]   ;;  %v1456_v58 = vld [vmem:[#allocation3 + $0x38] ss:$12 sps:$4 sm:$0xff]   ;;  %v1457_v61 = vld [vmem:[#allocation3 + $0x50] ss:$12 sps:$4 sm:$0xff]  }
  0x1a   :  { %v75_v3 = vadd.s32 128, %v1615_v2  ;;  %v76_v4 = vadd.s32 136, %v1615_v2  ;;  %v60_v5 = vadd.s32 8, %v1615_v2  ;;  %v91_v8 = vadd.s32 256, %v1615_v2  ;;  %v1452_v59 = vld [vmem:[#allocation3 + $0x18] ss:$12 sps:$4 sm:$0xff]  }
  0x1b   :  { %vm111_vm5 = vcmp.eq.s32.totalorder %v1615_v2, %v1623_v6  ;;  %vm163_vm6 = vcmp.eq.s32.totalorder %v1615_v2, %v1628_v7  ;;  %v92_v9 = vadd.s32 264, %v1615_v2  ;;  %v77_v12 = vadd.s32 144, %v1615_v2  ;;  %v1453_v60 = vld [vmem:[#allocation3 + $0x34] ss:$12 sps:$4 sm:$0xff]   ;;  %v1455_v63 = vld [vmem:[#allocation3 + $0x30] ss:$12 sps:$4 sm:$0xff]  }
  0x1c   :  { %vm127_vm0 = vcmp.eq.s32.totalorder %v75_v3, %v1623_v6  ;;  %vm128_vm1 = vcmp.eq.s32.totalorder %v76_v4, %v1623_v6  ;;  %vm179_vm2 = vcmp.eq.s32.totalorder %v75_v3, %v1628_v7  ;;  %vm180_vm3 = vcmp.eq.s32.totalorder %v76_v4, %v1628_v7  ;;  %vm211_vm11 = vmor %vm111_vm5, %vm163_vm6  ;;  %v1464_v62 = vld [vmem:[#allocation3 + $0x68] ss:$12 sps:$4 sm:$0xff]   ;;  %v1458_v0 = vld [vmem:[#allocation3 + $0x4c] ss:$12 sps:$4 sm:$0xff]  }
  0x1d   :  { %vm227_vm4 = vmor %vm127_vm0, %vm179_vm2  ;;  %vm112_vm8 = vcmp.eq.s32.totalorder %v60_v5, %v1623_v6  ;;  %vm164_vm9 = vcmp.eq.s32.totalorder %v60_v5, %v1628_v7  ;;  %vm143_vm12 = vcmp.eq.s32.totalorder %v91_v8, %v1623_v6  ;;  %vm195_vm13 = vcmp.eq.s32.totalorder %v91_v8, %v1628_v7  ;;  %v1465_v1 = vld [vmem:[#allocation3 + $0x80] ss:$12 sps:$4 sm:$0xff]   ;;  %v1472_v3 = vld [vmem:[#allocation3 + $0x98] ss:$12 sps:$4 sm:$0xff]  }
  0x1e   :  { %vm228_vm7 = vmor %vm128_vm1, %vm180_vm3  ;;  %v78_v14 = vadd.s32 152, %v1615_v2  ;;  %vm144_vm15 = vcmp.eq.s32.totalorder %v92_v9, %v1623_v6  ;;  %vm196_vm0 = vcmp.eq.s32.totalorder %v92_v9, %v1628_v7  ;;  %v61_v15 = vadd.s32 16, %v1615_v2  ;;  %v1460_v4 = vld [vmem:[#allocation3 + $0x48] ss:$12 sps:$4 sm:$0xff]   ;;  %v1461_v5 = vld [vmem:[#allocation3 + $0x64] ss:$12 sps:$4 sm:$0xff]  }
  0x1f   :  { %vm1216_vm10 = vmpackc.low %vm228_vm7, %vm227_vm4  ;;  %vm129_vm3 = vcmp.eq.s32.totalorder %v77_v12, %v1623_v6  ;;  %vm181_vm4 = vcmp.eq.s32.totalorder %v77_v12, %v1628_v7  ;;  %v62_v16 = vadd.s32 24, %v1615_v2  ;;  %v93_v17 = vadd.s32 272, %v1615_v2  ;;  %v1466_v8 = vld [vmem:[#allocation3 + $0x7c] ss:$12 sps:$4 sm:$0xff]   ;;  %v1468_v9 = vld [vmem:[#allocation3 + $0x78] ss:$12 sps:$4 sm:$0xff]  }
  0x20   :  { %1258 = vmatprep.subr.msk.bf16.mxu0 %vm1216_vm10, %v1535_v13  ;;  %vm212_vm14 = vmor %vm112_vm8, %vm164_vm9  ;;  %vm130_vm6 = vcmp.eq.s32.totalorder %v78_v14, %v1623_v6  ;;  %vm182_vm7 = vcmp.eq.s32.totalorder %v78_v14, %v1628_v7  ;;  %vm113_vm10 = vcmp.eq.s32.totalorder %v61_v15, %v1623_v6  ;;  %v94_v18 = vadd.s32 280, %v1615_v2  ;;  %v1469_v10 = vld [vmem:[#allocation3 + $0x94] ss:$12 sps:$4 sm:$0xff]   ;;  %v1471_v11 = vld [vmem:[#allocation3 + $0x90] ss:$12 sps:$4 sm:$0xff]  }
  0x21   :  { %vm1200_vm1 = vmpackc.low %vm212_vm14, %vm211_vm11  ;;  %vm165_vm11 = vcmp.eq.s32.totalorder %v61_v15, %v1628_v7  ;;  %vm166_vm14 = vcmp.eq.s32.totalorder %v62_v16, %v1628_v7  ;;  %v79_v19 = vadd.s32 160, %v1615_v2  ;;  %v80_v20 = vadd.s32 168, %v1615_v2  ;;  %v1474_v12 = vld [vmem:[#allocation3 + $0xac] ss:$12 sps:$4 sm:$0xff]   ;;  %v1477_v14 = vld [vmem:[%s1895_s3] sm:$0xff]  }
  0x22   :  { %1259 = vmatpush3.bf16.msk.msra.mxu0 %vm1200_vm1, %v1535_v13  ;;  %vm243_vm2 = vmor %vm143_vm12, %vm195_vm13  ;;  %vm114_vm13 = vcmp.eq.s32.totalorder %v62_v16, %v1623_v6  ;;  %vm145_vm1 = vcmp.eq.s32.totalorder %v93_v17, %v1623_v6  ;;  %v63_v21 = vadd.s32 32, %v1615_v2  ;;  %v64_v22 = vadd.s32 40, %v1615_v2  ;;  %v762_v15 = vld [vmem:[%s1896_s4] sm:$0xff]  ;;  %v764_v16 = vld [vmem:[%s1896_s4 + $0x10] sm:$0xff] }
  0x23   :  { %vm244_vm5 = vmor %vm144_vm15, %vm196_vm0  ;;  %v95_v23 = vadd.s32 288, %v1615_v2  ;;  %v96_v24 = vadd.s32 296, %v1615_v2  ;;  %v81_v25 = vadd.s32 176, %v1615_v2  ;;  %v82_v26 = vadd.s32 184, %v1615_v2 }
  0x24   :  { %vm1232_vm8 = vmpackc.low %vm244_vm5, %vm243_vm2  ;;  %vm197_vm2 = vcmp.eq.s32.totalorder %v93_v17, %v1628_v7  ;;  %vm198_vm5 = vcmp.eq.s32.totalorder %v94_v18, %v1628_v7  ;;  %v65_v27 = vadd.s32 48, %v1615_v2  ;;  %v66_v28 = vadd.s32 56, %v1615_v2 }
  0x25   :  { %1359 = vmatprep.subr.msk.bf16.mxu1 %vm1232_vm8, %v1535_v13  ;;  %vm229_vm9 = vmor %vm129_vm3, %vm181_vm4  ;;  %vm146_vm4 = vcmp.eq.s32.totalorder %v94_v18, %v1623_v6  ;;  %v97_v29 = vadd.s32 304, %v1615_v2  ;;  %v98_v30 = vadd.s32 312, %v1615_v2  ;;  %v83_v31 = vadd.s32 192, %v1615_v2  ;;  %v763_v18 = vld [vmem:[%s1896_s4 + $0x8] sm:$0xff] }
  0x26   :  { %1360 = vmatpush3.bf16.msk.msra.mxu1 %vm1232_vm8, %v1535_v13  ;;  %vm230_vm12 = vmor %vm130_vm6, %vm182_vm7  ;;  %vm131_vm8 = vcmp.eq.s32.totalorder %v79_v19, %v1623_v6  ;;  %v84_v32 = vadd.s32 200, %v1615_v2  ;;  %v67_v33 = vadd.s32 64, %v1615_v2  ;;  %v68_v34 = vadd.s32 72, %v1615_v2 }
  0x27   :  { %vm1218_vm15 = vmpackc.low %vm230_vm12, %vm229_vm9  ;;  %vm183_vm9 = vcmp.eq.s32.totalorder %v79_v19, %v1628_v7  ;;  %vm184_vm12 = vcmp.eq.s32.totalorder %v80_v20, %v1628_v7  ;;  %v99_v35 = vadd.s32 320, %v1615_v2  ;;  %v100_v36 = vadd.s32 328, %v1615_v2  ;;  %v765_v19 = vld [vmem:[%s1896_s4 + $0x18] sm:$0xff] }
  0x28   :  { %1260 = vmatprep.subr.msk.bf16.mxu0 %vm1218_vm15, %v1535_v13  ;;  %vm213_vm0 = vmor %vm113_vm10, %vm165_vm11  ;;  %vm132_vm11 = vcmp.eq.s32.totalorder %v80_v20, %v1623_v6  ;;  %vm115_vm15 = vcmp.eq.s32.totalorder %v63_v21, %v1623_v6  ;;  %v85_v37 = vadd.s32 208, %v1615_v2  ;;  %v86_v38 = vadd.s32 216, %v1615_v2  ;;  %v766_v20 = vld [vmem:[%s1896_s4 + $0x20] sm:$0xff] }
  0x29   :  { %vm214_vm3 = vmor %vm114_vm13, %vm166_vm14  ;;  %v69_v39 = vadd.s32 80, %v1615_v2  ;;  %v70_v40 = vadd.s32 88, %v1615_v2  ;;  %v101_v41 = vadd.s32 336, %v1615_v2  ;;  %v102_v42 = vadd.s32 344, %v1615_v2 }
  0x2a   :  { %vm1202_vm6 = vmpackc.low %vm214_vm3, %vm213_vm0  ;;  %vm167_vm0 = vcmp.eq.s32.totalorder %v63_v21, %v1628_v7  ;;  %vm168_vm3 = vcmp.eq.s32.totalorder %v64_v22, %v1628_v7  ;;  %v87_v43 = vadd.s32 224, %v1615_v2  ;;  %v88_v44 = vadd.s32 232, %v1615_v2  ;;  %v767_v21 = vld [vmem:[%s1896_s4 + $0x28] sm:$0xff] }
  0x2b   :  { %1261 = vmatpush3.bf16.msk.msra.mxu0 %vm1202_vm6, %v1535_v13  ;;  %vm245_vm7 = vmor %vm145_vm1, %vm197_vm2  ;;  %vm116_vm2 = vcmp.eq.s32.totalorder %v64_v22, %v1623_v6  ;;  %vm147_vm6 = vcmp.eq.s32.totalorder %v95_v23, %v1623_v6  ;;  %v71_v45 = vadd.s32 96, %v1615_v2  ;;  %v72_v46 = vadd.s32 104, %v1615_v2  ;;  %v768_v22 = vld [vmem:[%s1896_s4 + $0x30] sm:$0xff] }
  0x2c   :  { %vm246_vm10 = vmor %vm146_vm4, %vm198_vm5  ;;  %v103_v47 = vadd.s32 352, %v1615_v2  ;;  %v104_v48 = vadd.s32 360, %v1615_v2  ;;  %v89_v49 = vadd.s32 240, %v1615_v2  ;;  %v90_v50 = vadd.s32 248, %v1615_v2 }
  0x2d   :  { %vm1234_vm13 = vmpackc.low %vm246_vm10, %vm245_vm7  ;;  %vm199_vm7 = vcmp.eq.s32.totalorder %v95_v23, %v1628_v7  ;;  %vm200_vm10 = vcmp.eq.s32.totalorder %v96_v24, %v1628_v7  ;;  %v73_v51 = vadd.s32 112, %v1615_v2  ;;  %v74_v52 = vadd.s32 120, %v1615_v2  ;;  %v769_v23 = vld [vmem:[%s1896_s4 + $0x38] sm:$0xff] }
  0x2e   :  { %1361 = vmatprep.subr.msk.bf16.mxu1 %vm1234_vm13, %v1535_v13  ;;  %vm231_vm14 = vmor %vm131_vm8, %vm183_vm9  ;;  %vm148_vm9 = vcmp.eq.s32.totalorder %v96_v24, %v1623_v6  ;;  %v105_v53 = vadd.s32 368, %v1615_v2  ;;  %v106_v54 = vadd.s32 376, %v1615_v2  ;;  %v1536_v17 = vmov 0   ;;  %v915_v24 = vld [vmem:[%s1898_s6] sm:$0xff] }
  0x2f   :  { %1362 = vmatpush3.bf16.msk.msra.mxu1 %vm1234_vm13, %v1535_v13  ;;  %vm232_vm1 = vmor %vm132_vm11, %vm184_vm12  ;;  %vm133_vm13 = vcmp.eq.s32.totalorder %v81_v25, %v1623_v6  ;;  %1443 = vset.pattern.permute.xlu0 %v1536_v17 }
  0x30   :  { %vm1220_vm4 = vmpackc.low %vm232_vm1, %vm231_vm14  ;;  %vm185_vm14 = vcmp.eq.s32.totalorder %v81_v25, %v1628_v7  ;;  %vm186_vm1 = vcmp.eq.s32.totalorder %v82_v26, %v1628_v7  ;;  %1444 = vset.pattern.permute.xlu1 %v1536_v17  ;;  %772 = vperm.xlu0 %1443, %v762_v15   ;;  %v916_v25 = vld [vmem:[%s1898_s6 + $0x8] sm:$0xff] }
  0x31   :  { %1262 = vmatprep.subr.msk.bf16.mxu0 %vm1220_vm4, %v1535_v13  ;;  %vm215_vm5 = vmor %vm115_vm15, %vm167_vm0  ;;  %vm134_vm0 = vcmp.eq.s32.totalorder %v82_v26, %v1623_v6  ;;  %vm117_vm4 = vcmp.eq.s32.totalorder %v65_v27, %v1623_v6  ;;  %782 = vperm.xlu1 %1444, %v764_v16   ;;  %v917_v26 = vld [vmem:[%s1898_s6 + $0x10] sm:$0xff] }
  0x32   :  { %vm216_vm8 = vmor %vm116_vm2, %vm168_vm3 }
  0x33   :  { %vm1204_vm11 = vmpackc.low %vm216_vm8, %vm215_vm5  ;;  %vm169_vm5 = vcmp.eq.s32.totalorder %v65_v27, %v1628_v7  ;;  %vm170_vm8 = vcmp.eq.s32.totalorder %v66_v28, %v1628_v7  ;;  %v918_v27 = vld [vmem:[%s1898_s6 + $0x18] sm:$0xff] }
  0x34   :  { %1263 = vmatpush3.bf16.msk.msra.mxu0 %vm1204_vm11, %v1535_v13  ;;  %vm247_vm12 = vmor %vm147_vm6, %vm199_vm7  ;;  %vm118_vm7 = vcmp.eq.s32.totalorder %v66_v28, %v1623_v6  ;;  %vm149_vm11 = vcmp.eq.s32.totalorder %v97_v29, %v1623_v6  ;;  %777 = vperm.xlu0 %1443, %v763_v18   ;;  %v1013_v28 = vld [vmem:[%s1900_s8] sm:$0xff] }
  0x35   :  { %vm248_vm15 = vmor %vm148_vm9, %vm200_vm10  ;;  %787 = vperm.xlu1 %1444, %v765_v19  }
  0x36   :  { %vm1236_vm2 = vmpackc.low %vm248_vm15, %vm247_vm12  ;;  %vm201_vm12 = vcmp.eq.s32.totalorder %v97_v29, %v1628_v7  ;;  %vm202_vm15 = vcmp.eq.s32.totalorder %v98_v30, %v1628_v7  ;;  %v1014_v29 = vld [vmem:[%s1900_s8 + $0x8] sm:$0xff] }
  0x37   :  { %1363 = vmatprep.subr.msk.bf16.mxu1 %vm1236_vm2, %v1535_v13  ;;  %vm233_vm3 = vmor %vm133_vm13, %vm185_vm14  ;;  %vm150_vm14 = vcmp.eq.s32.totalorder %v98_v30, %v1623_v6  ;;  %v1077_v30 = vld [vmem:[%s1901_s9] sm:$0xff] }
  0x38   :  { %1364 = vmatpush3.bf16.msk.msra.mxu1 %vm1236_vm2, %v1535_v13  ;;  %vm234_vm6 = vmor %vm134_vm0, %vm186_vm1  ;;  %vm135_vm2 = vcmp.eq.s32.totalorder %v83_v31, %v1623_v6  ;;  %792 = vperm.xlu0 %1443, %v766_v20  }
  0x39   :  { %vm1222_vm9 = vmpackc.low %vm234_vm6, %vm233_vm3  ;;  %vm187_vm3 = vcmp.eq.s32.totalorder %v83_v31, %v1628_v7  ;;  %vm188_vm6 = vcmp.eq.s32.totalorder %v84_v32, %v1628_v7  ;;  %797 = vperm.xlu1 %1444, %v767_v21   ;;  %v1078_v31 = vld [vmem:[%s1901_s9 + $0x8] sm:$0xff] }
  0x3a   :  { %1264 = vmatprep.subr.msk.bf16.mxu0 %vm1222_vm9, %v1535_v13  ;;  %vm217_vm10 = vmor %vm117_vm4, %vm169_vm5  ;;  %vm136_vm5 = vcmp.eq.s32.totalorder %v84_v32, %v1623_v6  ;;  %vm119_vm9 = vcmp.eq.s32.totalorder %v67_v33, %v1623_v6  ;;  %v1099_v32 = vld [vmem:[#allocation2] sm:$0x1] }
  0x3b   :  { %vm218_vm13 = vmor %vm118_vm7, %vm170_vm8 }
  0x3c   :  { %vm1206_vm0 = vmpackc.low %vm218_vm13, %vm217_vm10  ;;  %vm171_vm10 = vcmp.eq.s32.totalorder %v67_v33, %v1628_v7  ;;  %vm172_vm13 = vcmp.eq.s32.totalorder %v68_v34, %v1628_v7  ;;  %802 = vperm.xlu0 %1443, %v768_v22  }
  0x3d   :  { %1265 = vmatpush3.bf16.msk.msra.mxu0 %vm1206_vm0, %v1535_v13  ;;  %vm249_vm1 = vmor %vm149_vm11, %vm201_vm12  ;;  %vm120_vm12 = vcmp.eq.s32.totalorder %v68_v34, %v1623_v6  ;;  %vm151_vm0 = vcmp.eq.s32.totalorder %v99_v35, %v1623_v6  ;;  %807 = vperm.xlu1 %1444, %v769_v23  }
  0x3e   :  { %vm250_vm4 = vmor %vm150_vm14, %vm202_vm15 }
  0x3f   :  { %vm1238_vm7 = vmpackc.low %vm250_vm4, %vm249_vm1  ;;  %vm203_vm1 = vcmp.eq.s32.totalorder %v99_v35, %v1628_v7  ;;  %vm204_vm4 = vcmp.eq.s32.totalorder %v100_v36, %v1628_v7 }
  0x40   :  { %1365 = vmatprep.subr.msk.bf16.mxu1 %vm1238_vm7, %v1535_v13  ;;  %vm235_vm8 = vmor %vm135_vm2, %vm187_vm3  ;;  %vm152_vm3 = vcmp.eq.s32.totalorder %v100_v36, %v1623_v6  ;;  %921 = vperm.xlu0 %1443, %v915_v24  }
  0x41   :  { %1366 = vmatpush3.bf16.msk.msra.mxu1 %vm1238_vm7, %v1535_v13  ;;  %vm236_vm11 = vmor %vm136_vm5, %vm188_vm6  ;;  %vm137_vm7 = vcmp.eq.s32.totalorder %v85_v37, %v1623_v6  ;;  %926 = vperm.xlu1 %1444, %v916_v25  }
  0x42   :  { %vm1224_vm14 = vmpackc.low %vm236_vm11, %vm235_vm8  ;;  %vm189_vm8 = vcmp.eq.s32.totalorder %v85_v37, %v1628_v7  ;;  %vm190_vm11 = vcmp.eq.s32.totalorder %v86_v38, %v1628_v7 }
  0x43   :  { %1266 = vmatprep.subr.msk.bf16.mxu0 %vm1224_vm14, %v1535_v13  ;;  %vm219_vm15 = vmor %vm119_vm9, %vm171_vm10  ;;  %vm138_vm10 = vcmp.eq.s32.totalorder %v86_v38, %v1623_v6  ;;  %vm121_vm14 = vcmp.eq.s32.totalorder %v69_v39, %v1623_v6 }
  0x44   :  { %vm220_vm2 = vmor %vm120_vm12, %vm172_vm13  ;;  %931 = vperm.xlu0 %1443, %v917_v26  }
  0x45   :  { %vm1208_vm5 = vmpackc.low %vm220_vm2, %vm219_vm15  ;;  %vm173_vm15 = vcmp.eq.s32.totalorder %v69_v39, %v1628_v7  ;;  %vm174_vm2 = vcmp.eq.s32.totalorder %v70_v40, %v1628_v7  ;;  %936 = vperm.xlu1 %1444, %v918_v27  }
  0x46   :  { %1267 = vmatpush3.bf16.msk.msra.mxu0 %vm1208_vm5, %v1535_v13  ;;  %vm251_vm6 = vmor %vm151_vm0, %vm203_vm1  ;;  %vm122_vm1 = vcmp.eq.s32.totalorder %v70_v40, %v1623_v6  ;;  %vm153_vm5 = vcmp.eq.s32.totalorder %v101_v41, %v1623_v6 }
  0x47   :  { %vm252_vm9 = vmor %vm152_vm3, %vm204_vm4 }
  0x48   :  { %vm1240_vm12 = vmpackc.low %vm252_vm9, %vm251_vm6  ;;  %vm205_vm6 = vcmp.eq.s32.totalorder %v101_v41, %v1628_v7  ;;  %vm206_vm9 = vcmp.eq.s32.totalorder %v102_v42, %v1628_v7  ;;  %1017 = vperm.xlu0 %1443, %v1013_v28  }
  0x49   :  { %1367 = vmatprep.subr.msk.bf16.mxu1 %vm1240_vm12, %v1535_v13  ;;  %vm237_vm13 = vmor %vm137_vm7, %vm189_vm8  ;;  %vm154_vm8 = vcmp.eq.s32.totalorder %v102_v42, %v1623_v6  ;;  %1022 = vperm.xlu1 %1444, %v1014_v29  }
  0x4a   :  { %1368 = vmatpush3.bf16.msk.msra.mxu1 %vm1240_vm12, %v1535_v13  ;;  %vm238_vm0 = vmor %vm138_vm10, %vm190_vm11  ;;  %vm139_vm12 = vcmp.eq.s32.totalorder %v87_v43, %v1623_v6 }
  0x4b   :  { %vm1226_vm3 = vmpackc.low %vm238_vm0, %vm237_vm13  ;;  %vm191_vm13 = vcmp.eq.s32.totalorder %v87_v43, %v1628_v7  ;;  %vm192_vm0 = vcmp.eq.s32.totalorder %v88_v44, %v1628_v7 }
  0x4c   :  { %1268 = vmatprep.subr.msk.bf16.mxu0 %vm1226_vm3, %v1535_v13  ;;  %vm221_vm4 = vmor %vm121_vm14, %vm173_vm15  ;;  %vm140_vm15 = vcmp.eq.s32.totalorder %v88_v44, %v1623_v6  ;;  %vm123_vm3 = vcmp.eq.s32.totalorder %v71_v45, %v1623_v6  ;;  %1081 = vperm.xlu0 %1443, %v1077_v30  }
  0x4d   :  { %vm222_vm7 = vmor %vm122_vm1, %vm174_vm2  ;;  %1086 = vperm.xlu1 %1444, %v1078_v31  }
  0x4e   :  { %vm1210_vm10 = vmpackc.low %vm222_vm7, %vm221_vm4  ;;  %vm175_vm4 = vcmp.eq.s32.totalorder %v71_v45, %v1628_v7  ;;  %vm176_vm7 = vcmp.eq.s32.totalorder %v72_v46, %v1628_v7 }
  0x4f   :  { %1269 = vmatpush3.bf16.msk.msra.mxu0 %vm1210_vm10, %v1535_v13  ;;  %vm253_vm11 = vmor %vm153_vm5, %vm205_vm6  ;;  %vm124_vm6 = vcmp.eq.s32.totalorder %v72_v46, %v1623_v6  ;;  %vm155_vm10 = vcmp.eq.s32.totalorder %v103_v47, %v1623_v6 }
  0x50   :  { %vm254_vm14 = vmor %vm154_vm8, %vm206_vm9  ;;  %1102 = vperm.xlu0 %1443, %v1099_v32  }
  0x51   :  { %vm1242_vm1 = vmpackc.low %vm254_vm14, %vm253_vm11  ;;  %vm207_vm11 = vcmp.eq.s32.totalorder %v103_v47, %v1628_v7  ;;  %vm208_vm14 = vcmp.eq.s32.totalorder %v104_v48, %v1628_v7 }
  0x52   :  { %1369 = vmatprep.subr.msk.bf16.mxu1 %vm1242_vm1, %v1535_v13  ;;  %vm239_vm2 = vmor %vm139_vm12, %vm191_vm13  ;;  %vm156_vm13 = vcmp.eq.s32.totalorder %v104_v48, %v1623_v6 }
  0x53   :  { %1370 = vmatpush3.bf16.msk.msra.mxu1 %vm1242_vm1, %v1535_v13  ;;  %vm240_vm5 = vmor %vm140_vm15, %vm192_vm0  ;;  %vm141_vm1 = vcmp.eq.s32.totalorder %v89_v49, %v1623_v6 }
  0x54   :  { %vm1228_vm8 = vmpackc.low %vm240_vm5, %vm239_vm2  ;;  %vm193_vm2 = vcmp.eq.s32.totalorder %v89_v49, %v1628_v7  ;;  %vm194_vm5 = vcmp.eq.s32.totalorder %v90_v50, %v1628_v7 }
  0x55   :  { %1270 = vmatprep.subr.msk.bf16.mxu0 %vm1228_vm8, %v1535_v13  ;;  %vm223_vm9 = vmor %vm123_vm3, %vm175_vm4  ;;  %vm142_vm4 = vcmp.eq.s32.totalorder %v90_v50, %v1623_v6  ;;  %vm125_vm8 = vcmp.eq.s32.totalorder %v73_v51, %v1623_v6 }
  0x56   :  { %vm224_vm12 = vmor %vm124_vm6, %vm176_vm7 }
  0x57   :  { %vm1212_vm15 = vmpackc.low %vm224_vm12, %vm223_vm9  ;;  %vm177_vm9 = vcmp.eq.s32.totalorder %v73_v51, %v1628_v7  ;;  %vm178_vm12 = vcmp.eq.s32.totalorder %v74_v52, %v1628_v7 }
  0x58   :  { %1271 = vmatpush3.bf16.msk.msra.mxu0 %vm1212_vm15, %v1535_v13  ;;  %vm255_vm0 = vmor %vm155_vm10, %vm207_vm11  ;;  %vm126_vm11 = vcmp.eq.s32.totalorder %v74_v52, %v1623_v6  ;;  %vm157_vm15 = vcmp.eq.s32.totalorder %v105_v53, %v1623_v6 }
  0x59   :  { %vm256_vm3 = vmor %vm156_vm13, %vm208_vm14 }
  0x5a   :  { %vm1244_vm6 = vmpackc.low %vm256_vm3, %vm255_vm0  ;;  %vm209_vm0 = vcmp.eq.s32.totalorder %v105_v53, %v1628_v7  ;;  %vm210_vm3 = vcmp.eq.s32.totalorder %v106_v54, %v1628_v7  ;;  %v1463_v7 = vld [vmem:[#allocation3 + $0x60] ss:$12 sps:$4 sm:$0xff]  }
  0x5b   :  { %1371 = vmatprep.subr.msk.bf16.mxu1 %vm1244_vm6, %v1535_v13  ;;  %vm241_vm7 = vmor %vm141_vm1, %vm193_vm2  ;;  %vm158_vm2 = vcmp.eq.s32.totalorder %v106_v54, %v1623_v6  ;;  %v1473_v6 = vld [vmem:[#allocation3 + $0xb0] ss:$12 sps:$4 sm:$0xff]  }
  0x5c   :  { %1372 = vmatpush3.bf16.msk.msra.mxu1 %vm1244_vm6, %v1535_v13  ;;  %vm242_vm10 = vmor %vm142_vm4, %vm194_vm5 }
  0x5d   :  { %vm1230_vm13 = vmpackc.low %vm242_vm10, %vm241_vm7  ;;  %vm1030_vm10 = vcmask 261120  }
  0x5e   :  { %1272 = vmatprep.subr.msk.bf16.mxu0 %vm1230_vm13, %v1535_v13  ;;  %vm225_vm14 = vmor %vm125_vm8, %vm177_vm9  ;;  %vm949_vm8 = vcmask 523264   ;;  %vm1538_vm9 = vmmov 0  }
  0x5f   :  { %vm226_vm1 = vmor %vm126_vm11, %vm178_vm12 }
  0x60   :  { %vm1214_vm6 = vmpackc.low %vm226_vm1, %vm225_vm14 }
  0x61   :  { %1273 = vmatpush3.bf16.msk.msra.mxu0 %vm1214_vm6, %v1535_v13  ;;  %vm257_vm4 = vmor %vm157_vm15, %vm209_vm0 }
  0x62   :  { %vm258_vm5 = vmor %vm158_vm2, %vm210_vm3 }
  0x63   :  { %vm1246_vm7 = vmpackc.low %vm258_vm5, %vm257_vm4 }
  0x64   :  { %1373 = vmatprep.subr.msk.bf16.mxu1 %vm1246_vm7, %v1535_v13  ;;  %572 = vmatmul.mubr.bf16.vlgmr.msra.gmra.mrb[0].mxu0 %v1445_v55 }
  0x65   :  { %1374 = vmatpush3.bf16.msk.msra.mxu1 %vm1246_vm7, %v1535_v13  ;;  %579 = vmatprep.mubr.bf16.mxu0 %v1450_v56  ;;  %v1476_v13 = vld [vmem:[#allocation3 + $0xa8] ss:$12 sps:$4 sm:$0xff]  }
  0x68   :  { %1376 = vmatmul.mubr.bf16.vlgmr.msra.gmra.mrb[0].mxu1 %v1449_v57 }
  0x69   :  { %1379 = vmatprep.mubr.bf16.mxu1 %v1456_v58 }
  0x6c   :  { %580 = vmatmul.mubr.bf16.gmra.mrb[4].mxu0 %v1452_v59 }
  0x6d   :  { %587 = vmatprep.mubr.bf16.mxu0 %v1453_v60 }
  0x70   :  { %1380 = vmatmul.mubr.bf16.gmra.mrb[4].mxu1 %v1457_v61 }
  0x71   :  { %1383 = vmatprep.mubr.bf16.mxu1 %v1464_v62 }
  0x74   :  { %588 = vmatmul.mubr.bf16.gmra.mrb[8].mxu0 %v1455_v63 }
  0x75   :  { %595 = vmatprep.mubr.bf16.mxu0 %v1458_v0 }
  0x78   :  { %1384 = vmatmul.mubr.bf16.gmra.mrb[8].mxu1 %v1465_v1 }
  0x79   :  { %1387 = vmatprep.mubr.bf16.mxu1 %v1472_v3 }
  0x7c   :  { %596 = vmatmul.mubr.bf16.gmra.mrb[12].mxu0 %v1460_v4 }
  0x7d   :  { %603 = vmatprep.mubr.bf16.mxu0 %v1461_v5 }
  0x80   :  { %1388 = vmatmul.mubr.bf16.gmra.mrb[12].mxu1 %v1473_v6 }
  0x81   :  { %1407 = vmatprep.mubr.bf16.mxu1 %v1477_v14 }
  0x84   :  { %604 = vmatmul.mubr.bf16.gmra.mrb[16].mxu0 %v1463_v7 }
  0x85   :  { %611 = vmatprep.mubr.bf16.mxu0 %v1466_v8 }
  0x8c   :  { %612 = vmatmul.mubr.bf16.gmra.mrb[20].mxu0 %v1468_v9 }
  0x8d   :  { %619 = vmatprep.mubr.bf16.mxu0 %v1469_v10 }
  0x94   :  { %620 = vmatmul.mubr.bf16.gmra.mrb[24].mxu0 %v1471_v11 }
  0x95   :  { %627 = vmatprep.mubr.bf16.mxu0 %v1474_v12 }
  0x9c   :  { %628 = vmatmul.mubr.bf16.gmra.mrb[28].mxu0 %v1476_v13 }
 0x137   :  { %v1274_v33 = vpop.f32.mrb[0].mxu0 }
 0x138   :  { %v1275_v34 = vpop.f32.mrb[1].mxu0 }
 0x139   :  { %v1276_v35 = vadd.f32 %v1275_v34, %v1274_v33  ;;  %v1277_v36 = vpop.f32.mrb[2].mxu0 }
 0x13a   :  { %v1278_v37 = vpop.f32.mrb[3].mxu0 }
 0x13b   :  { %v1377_v38 = vpop.f32.mrb[0].mxu1  ;;  %v1279_v39 = vadd.f32 %v1278_v37, %v1277_v36 }
 0x13c   :  { %v670_v40 = vpop.f32.mrb[1].mxu1 }
 0x13d   :  { %v671_v41 = vadd.f32 %v1276_v35, %v670_v40  ;;  %v1378_v42 = vpop.f32.mrb[2].mxu1 }
 0x13e   :  { %v673_v43 = vpop.f32.mrb[3].mxu1 }
 0x13f   :  { %v674_v44 = vadd.f32 %v1279_v39, %v673_v43  ;;  %v1280_v45 = vpop.f32.mrb[4].mxu0 }
 0x140   :  { %v1281_v46 = vpop.f32.mrb[5].mxu0 }
 0x141   :  { %v754_v47 = vpack.c.bf16 %v674_v44, %v671_v41  ;;  %v1282_v48 = vadd.f32 %v1281_v46, %v1280_v45  ;;  %v1283_v49 = vpop.f32.mrb[6].mxu0 }
 0x142   :  { %v1284_v50 = vpop.f32.mrb[7].mxu0 }
 0x143   :  { %v679_v51 = vadd.f32 %v1377_v38, %v1282_v48  ;;  %1391 = vmatprep.subr.bf16.mxu1 %v754_v47  ;;  %v1285_v52 = vadd.f32 %v1284_v50, %v1283_v49  ;;  %v1381_v53 = vpop.f32.mrb[4].mxu1 }
 0x144   :  { %1392 = vmatpush3.bf16.msra.mxu1 %v754_v47  ;;  %v686_v54 = vpop.f32.mrb[5].mxu1 }
 0x145   :  { %v682_v55 = vadd.f32 %v1378_v42, %v1285_v52  ;;  %v1382_v56 = vpop.f32.mrb[6].mxu1 }
 0x146   :  { %v689_v57 = vpop.f32.mrb[7].mxu1 }
 0x147   :  { %v1286_v58 = vpop.f32.mrb[8].mxu0  ;;  %v755_v59 = vpack.c.bf16 %v682_v55, %v679_v51 }
 0x148   :  { %v1287_v60 = vpop.f32.mrb[9].mxu0 }
 0x149   :  { %v1288_v61 = vadd.f32 %v1287_v60, %v1286_v58  ;;  %v1289_v62 = vpop.f32.mrb[10].mxu0  ;;  %1393 = vmatprep.subr.bf16.mxu1 %v755_v59 }
 0x14a   :  { %v1290_v63 = vpop.f32.mrb[11].mxu0  ;;  %1394 = vmatpush3.bf16.msra.mxu1 %v755_v59 }
 0x14b   :  { %v1291_v0 = vadd.f32 %v1290_v63, %v1289_v62  ;;  %v687_v1 = vadd.f32 %v1288_v61, %v686_v54  ;;  %v1385_v3 = vpop.f32.mrb[8].mxu1 }
 0x14c   :  { %v702_v4 = vpop.f32.mrb[9].mxu1 }
 0x14d   :  { %v733_v5 = vmul.f32 %v687_v1, %v671_v41  ;;  %v690_v6 = vadd.f32 %v1291_v0, %v689_v57  ;;  %v1386_v7 = vpop.f32.mrb[10].mxu1 }
 0x14e   :  { %v705_v8 = vpop.f32.mrb[11].mxu1 }
 0x14f   :  { %v734_v9 = vmul.f32 %v690_v6, %v674_v44  ;;  %v756_v10 = vpack.c.bf16 %v690_v6, %v687_v1  ;;  %v1292_v11 = vpop.f32.mrb[12].mxu0  ;;  %v1478_v1 = vld [vmem:[%s1895_s3 + $0x8] sm:$0xff]   ;;  %v773_v6 = vpop.permute.xlu0 %772 }
 0x150   :  { %v1293_v12 = vpop.f32.mrb[13].mxu0 }
 0x151   :  { %v737_v13 = vadd.f32 %v734_v9, %v733_v5  ;;  %v1294_v14 = vadd.f32 %v1293_v12, %v1292_v11  ;;  %v1295_v15 = vpop.f32.mrb[14].mxu0  ;;  %1395 = vmatprep.subr.bf16.mxu1 %v756_v10  ;;  %v1481_v5 = vld [vmem:[%s1897_s5] sm:$0xff]  }
 0x152   :  { %v1296_v16 = vpop.f32.mrb[15].mxu0  ;;  %1396 = vmatpush3.bf16.msra.mxu1 %v756_v10 }
 0x153   :  { %v695_v17 = vadd.f32 %v1381_v53, %v1294_v14  ;;  %v1297_v18 = vadd.f32 %v1296_v16, %v1295_v15  ;;  %v1389_v19 = vpop.f32.mrb[12].mxu1 }
 0x154   :  { %v718_v20 = vpop.f32.mrb[13].mxu1 }
 0x155   :  { %v735_v21 = vmul.f32 %v695_v17, %v679_v51  ;;  %v698_v22 = vadd.f32 %v1382_v56, %v1297_v18  ;;  %v1390_v23 = vpop.f32.mrb[14].mxu1 }
 0x156   :  { %v721_v24 = vpop.f32.mrb[15].mxu1 }
 0x157   :  { %v738_v25 = vadd.f32 %v737_v13, %v735_v21  ;;  %v736_v26 = vmul.f32 %v698_v22, %v682_v55  ;;  %v1298_v27 = vpop.f32.mrb[16].mxu0  ;;  %v757_v28 = vpack.c.bf16 %v698_v22, %v695_v17 }
 0x158   :  { %v1299_v29 = vpop.f32.mrb[17].mxu0 }
 0x159   :  { %v1855_v30 = vadd.f32 %v738_v25, %v736_v26  ;;  %v1300_v31 = vadd.f32 %v1299_v29, %v1298_v27  ;;  %v1301_v32 = vpop.f32.mrb[18].mxu0  ;;  %1397 = vmatprep.subr.bf16.mxu1 %v757_v28 }
 0x15a   :  { %v1302_v33 = vpop.f32.mrb[19].mxu0  ;;  %1398 = vmatpush3.bf16.msra.mxu1 %v757_v28 }
 0x15b   :  { %v1303_v34 = vadd.f32 %v1302_v33, %v1301_v32  ;;  %v703_v35 = vadd.f32 %v1300_v31, %v702_v4  ;;  %v1480_v4 = vld [vmem:[%s1895_s3 + $0x18] sm:$0xff]  }
 0x15d   :  { %v706_v36 = vadd.f32 %v1303_v34, %v705_v8  ;;  %v778_v8 = vpop.permute.xlu0 %777 }
 0x15f   :  { %v758_v37 = vpack.c.bf16 %v706_v36, %v703_v35  ;;  %v1304_v38 = vpop.f32.mrb[20].mxu0 }
 0x160   :  { %v1305_v39 = vpop.f32.mrb[21].mxu0 }
 0x161   :  { %v1306_v40 = vadd.f32 %v1305_v39, %v1304_v38  ;;  %v1307_v41 = vpop.f32.mrb[22].mxu0  ;;  %1399 = vmatprep.subr.bf16.mxu1 %v758_v37  ;;  %v793_v13 = vpop.permute.xlu0 %792 }
 0x162   :  { %v1308_v42 = vpop.f32.mrb[23].mxu0  ;;  %1400 = vmatpush3.bf16.msra.mxu1 %v758_v37 }
 0x163   :  { %v711_v43 = vadd.f32 %v1385_v3, %v1306_v40  ;;  %v1309_v44 = vadd.f32 %v1308_v42, %v1307_v41  ;;  %v1479_v3 = vld [vmem:[%s1895_s3 + $0x10] sm:$0xff]  }
 0x165   :  { %v714_v45 = vadd.f32 %v1386_v7, %v1309_v44  ;;  %v783_v7 = vpop.permute.xlu1 %782  ;;  %v803_v25 = vpop.permute.xlu0 %802  ;;  %v1537_v44 = vmov 0.0  }
 0x167   :  { %v1310_v46 = vpop.f32.mrb[24].mxu0  ;;  %v759_v47 = vpack.c.bf16 %v714_v45, %v711_v43  ;;  %v1482_v43 = vld [vmem:[%s1897_s5 + $0x8] sm:$0xff]  }
 0x168   :  { %v1311_v48 = vpop.f32.mrb[25].mxu0 }
 0x169   :  { %v1312_v49 = vadd.f32 %v1311_v48, %v1310_v46  ;;  %v1313_v50 = vpop.f32.mrb[26].mxu0  ;;  %1401 = vmatprep.subr.bf16.mxu1 %v759_v47  ;;  %v788_v9 = vpop.permute.xlu1 %787 }
 0x16a   :  { %v1314_v51 = vpop.f32.mrb[27].mxu0  ;;  %1402 = vmatpush3.bf16.msra.mxu1 %v759_v47  ;;  %v922_v45 = vpop.permute.xlu0 %921 }
 0x16b   :  { %v1315_v52 = vadd.f32 %v1314_v51, %v1313_v50  ;;  %v719_v53 = vadd.f32 %v1312_v49, %v718_v20 }
 0x16d   :  { %v722_v54 = vadd.f32 %v1315_v52, %v721_v24  ;;  %v798_v18 = vpop.permute.xlu1 %797 }
 0x16e   :  { %v932_v47 = vpop.permute.xlu0 %931 }
 0x16f   :  { %v760_v55 = vpack.c.bf16 %v722_v54, %v719_v53  ;;  %v1316_v56 = vpop.f32.mrb[28].mxu0 }
 0x170   :  { %v1317_v57 = vpop.f32.mrb[29].mxu0 }
 0x171   :  { %v1318_v58 = vadd.f32 %v1317_v57, %v1316_v56  ;;  %v1319_v59 = vpop.f32.mrb[30].mxu0  ;;  %1403 = vmatprep.subr.bf16.mxu1 %v760_v55  ;;  %v808_v31 = vpop.permute.xlu1 %807 }
 0x172   :  { %v1320_v60 = vpop.f32.mrb[31].mxu0  ;;  %1404 = vmatpush3.bf16.msra.mxu1 %v760_v55 }
 0x173   :  { %v727_v61 = vadd.f32 %v1389_v19, %v1318_v58  ;;  %v1321_v62 = vadd.f32 %v1320_v60, %v1319_v59 }
 0x175   :  { %v730_v63 = vadd.f32 %v1390_v23, %v1321_v62  ;;  %v927_v46 = vpop.permute.xlu1 %926 }
 0x177   :  { %v761_v0 = vpack.c.bf16 %v730_v63, %v727_v61  ;;  %v1483_v63 = vld [vmem:[%s1899_s7] sm:$0xff]   ;;  %s1539_s7 = smov [#allocation6]  }
 0x178   :  { %s1117_s30 = sshll.u32 %s1539_s7, 4  ;;  %s1118_s30 = int_to_ptr.vmem [resolvable:$true] %s1117_s30 }
 0x179   :  { %1405 = vmatprep.subr.bf16.mxu1 %v761_v0  ;;  %v937_v51 = vpop.permute.xlu1 %936  ;;  %s1506_s12 = scalar_lea.vmem %s1118_s30, 16  ;;  %s1510_s13 = scalar_lea.vmem %s1118_s30, 32 }
 0x17a   :  { %1406 = vmatpush3.bf16.msra.mxu1 %v761_v0  ;;  %v1018_v0 = vpop.permute.xlu0 %1017  ;;  %p1507_p8 = scmp.ne.s32.totalorder %s1118_s30, %s1506_s12  ;;  %p1511_p9 = scmp.lt.s32.totalorder %s1118_s30, %s1118_s30 }
 0x17b   :  { %p1512_p10 = scmp.lt.s32.totalorder %s1510_s13, %s1506_s12 }
 0x17d   :  { %1408 = vmatmul.mubr.bf16.vlgmr.msra.gmra.mrb[16].mxu1 %v1478_v1  ;;  %v1023_v1 = vpop.permute.xlu1 %1022  ;;  %p1513_p11 = por %p1512_p10, %p1511_p9 }
 0x17e   :  { %1411 = vmatprep.mubr.bf16.mxu1 %v1479_v3 }
 0x17f   :  { %p1514_p12 = pnand %p1513_p11, %p1507_p8 }
 0x185   :  { %1412 = vmatmul.mubr.bf16.gmra.mrb[20].mxu1 %v1480_v4  ;;  %v740_v4 = vrot.slane %v1855_v30, 4 }
 0x186   :  { %1423 = vmatprep.mubr.msk.bf16.mxu1 %vm949_vm8, %v1481_v5 }
 0x250   :  { %v1409_v10 = vpop.f32.mrb[16].mxu1 }
 0x251   :  { %v877_v11 = vadd.f32 %v1409_v10, %v783_v7  ;;  %v868_v12 = vpop.f32.mrb[17].mxu1 }
 0x252   :  { %v869_v14 = vadd.f32 %v868_v12, %v773_v6  ;;  %v1410_v15 = vpop.f32.mrb[18].mxu1 }
 0x253   :  { %v880_v16 = vadd.f32 %v1410_v15, %v788_v9  ;;  %v871_v17 = vpop.f32.mrb[19].mxu1  ;;  %v901_v20 = vmax.f32 %v877_v11, 0.0  ;;  %v741_v11 = vadd.f32 %v740_v4, %v1855_v30 }
 0x254   :  { %v872_v19 = vadd.f32 %v871_v17, %v778_v8  ;;  %v899_v22 = vmax.f32 %v869_v14, 0.0  ;;  %v1087_v14 = vpop.permute.xlu1 %1086 }
 0x255   :  { %v902_v21 = vmax.f32 %v880_v16, 0.0  ;;  %v742_v17 = vrot.slane %v741_v11, 2 }
 0x256   :  { %v900_v23 = vmax.f32 %v872_v19, 0.0 }
 0x257   :  { %v912_v24 = vpack.c.bf16 %v902_v21, %v901_v20  ;;  %v743_v21 = vadd.f32 %v742_v17, %v741_v11 }
 0x258   :  { %v911_v26 = vpack.c.bf16 %v900_v23, %v899_v22  ;;  %v1413_v27 = vpop.f32.mrb[20].mxu1 }
 0x259   :  { %v893_v28 = vadd.f32 %v1413_v27, %v803_v25  ;;  %v884_v29 = vpop.f32.mrb[21].mxu1  ;;  %v1107_v25 = vsub.s32 0, %v1615_v2 }
 0x25a   :  { %v885_v32 = vadd.f32 %v884_v29, %v793_v13  ;;  %v1414_v33 = vpop.f32.mrb[22].mxu1  ;;  %1415 = vmatprep.subr.bf16.mxu1 %v911_v26  ;;  %v1082_v13 = vpop.permute.xlu0 %1081 }
 0x25b   :  { %v896_v34 = vadd.f32 %v1414_v33, %v808_v31  ;;  %v887_v35 = vpop.f32.mrb[23].mxu1  ;;  %1416 = vmatpush3.bf16.msra.mxu1 %v911_v26  ;;  %v905_v37 = vmax.f32 %v893_v28, 0.0 }
 0x25c   :  { %v888_v36 = vadd.f32 %v887_v35, %v798_v18  ;;  %1417 = vmatprep.subr.bf16.mxu1 %v912_v24  ;;  %v903_v39 = vmax.f32 %v885_v32, 0.0 }
 0x25d   :  { %v906_v38 = vmax.f32 %v896_v34, 0.0 }
 0x25e   :  { %v904_v40 = vmax.f32 %v888_v36, 0.0  ;;  %v1103_v27 = vpop.permute.xlu0 %1102 }
 0x25f   :  { %v914_v41 = vpack.c.bf16 %v906_v38, %v905_v37  ;;  %1418 = vmatpush3.bf16.msra.mxu1 %v912_v24  ;;  %v744_v24 = vrot.slane %v743_v21, 1  ;;  %v1108_v30 = vrot.slane %v1103_v27, %v1107_v25 }
 0x260   :  { %v913_v42 = vpack.c.bf16 %v904_v40, %v903_v39 }
 0x261   :  { %v745_v28 = vadd.f32 %v744_v24, %v743_v21 }
 0x262   :  { %1419 = vmatprep.subr.bf16.mxu1 %v913_v42 }
 0x263   :  { %1420 = vmatpush3.bf16.msra.mxu1 %v913_v42 }
 0x264   :  { %1421 = vmatprep.subr.bf16.mxu1 %v914_v41 }
 0x267   :  { %1422 = vmatpush3.bf16.msra.mxu1 %v914_v41 }
 0x268   :  { %1427 = vmatprep.subr.bf16.mxu1 %v1537_v44 }
 0x26a   :  { %1424 = vmatmul.mubr.msk.bf16.vlgmr.msra.gmra.mrb[24].mxu1 %vm949_vm8, %v1482_v43 }
 0x26b   :  { %1431 = vmatprep.mubr.msk.bf16.mxu1 %vm1538_vm9, %v1537_v44 }
 0x33d   :  { %v1425_v48 = vpop.f32.mrb[24].mxu1 }
 0x33e   :  { %v999_v49 = vadd.f32 %v1425_v48, %v932_v47  ;;  %v990_v50 = vpop.f32.mrb[25].mxu1 }
 0x33f   :  { %v991_v52 = vadd.f32 %v990_v50, %v922_v45  ;;  %v1426_v53 = vpop.f32.mrb[26].mxu1 }
 0x340   :  { %v1002_v54 = vadd.f32 %v1426_v53, %v937_v51  ;;  %v993_v55 = vpop.f32.mrb[27].mxu1  ;;  %v1007_v57 = vmax.f32 %v999_v49, 0.0 }
 0x341   :  { %v994_v56 = vadd.f32 %v993_v55, %v927_v46  ;;  %v1005_v59 = vmax.f32 %v991_v52, 0.0 }
 0x342   :  { %v1008_v58 = vmax.f32 %v1002_v54, 0.0 }
 0x343   :  { %v1006_v60 = vmax.f32 %v994_v56, 0.0 }
 0x344   :  { %v1012_v61 = vpack.c.bf16 %v1008_v58, %v1007_v57 }
 0x345   :  { %v1011_v62 = vpack.c.bf16 %v1006_v60, %v1005_v59 }
 0x347   :  { %1428 = vmatpush3.bf16.msra.mxu1 %v1011_v62 }
 0x348   :  { %1429 = vmatprep.subr.bf16.mxu1 %v1537_v44 }
 0x34b   :  { %1430 = vmatpush3.bf16.msra.mxu1 %v1012_v61 }
 0x34e   :  { %1432 = vmatmul.mubr.msk.bf16.vlgmr.msra.gmra.mrb[28].mxu1 %vm1030_vm10, %v1483_v63 }
 0x421   :  { %v1068_v3 = vpop.f32.mrb[28].mxu1 }
 0x422   :  { %v1069_v5 = vadd.f32 %v1068_v3, %v1018_v0  ;;  %v1433_v6 = vpop.f32.mrb[29].mxu1 }
 0x423   :  { %v1071_v7 = vpop.f32.mrb[30].mxu1 }
 0x424   :  { %v1075_v8 = vmax.f32 %v1069_v5, 0.0  ;;  %v1072_v9 = vadd.f32 %v1071_v7, %v1023_v1  ;;  %v1434_v10 = vpop.f32.mrb[31].mxu1 }
 0x426   :  { %v1076_v12 = vmax.f32 %v1072_v9, 0.0  ;;  %v1089_v15 = vmul.f32 %v1082_v13, %v1075_v8 }
 0x428   :  { %v1090_v16 = vmul.f32 %v1087_v14, %v1076_v12 }
 0x42a   :  { %v1091_v18 = vadd.f32 %v1090_v16, %v1089_v15 }
 0x42c   :  { %v1092_v19 = vrot.slane %v1091_v18, 4 }
 0x42e   :  { %v1093_v20 = vadd.f32 %v1092_v19, %v1091_v18 }
 0x430   :  { %v1094_v22 = vrot.slane %v1093_v20, 2 }
 0x432   :  { %v1095_v23 = vadd.f32 %v1094_v22, %v1093_v20 }
 0x434   :  { %v1096_v26 = vrot.slane %v1095_v23, 1 }
 0x436   :  { %v1097_v29 = vadd.f32 %v1096_v26, %v1095_v23 }
 0x438   :  { %v1098_v31 = vadd.f32 %v1097_v29, %v745_v28 }
 0x43a   :  { %v1109_v32 = vadd.f32 %v1108_v30, %v1098_v31 }
 0x43c   :  { %1110 = vst [vmem:[#allocation6] sm:$0x1] %v1109_v32 }
 0x43d   :  { %1517 = shalt.err (!%p1514_p12)
}
 0x43e   :  { %s1518_s16 = scalar_lea.hbm %s1903_s11, 16 }
 0x43f   :  { %p1519_p13 = scmp.ne.s32.totalorder %s1903_s11, %s1518_s16  ;;  %p1522_p0 = scmp.lt.u32.totalorder %s1518_s16, %s1903_s11 }
 0x441   :  { %p1524_p1 = pnand %p1522_p0, %p1519_p13 }
 0x443   :  { %1527 = shalt.err (!%p1524_p1)
}
 0x444   :  { %1120 = dma.vmem_to_hbm [thread:$0]  %s1118_s30, 16, %s1903_s11, [#allocation5]  }
 0x445   :  { %1530 = dma.done.wait [#allocation5], 16  }
 0x446   :  { %1531 = vsyncadd [#allocation5], 4294967280 }
 0x447   :  { %1124 = vsyncpa [#allocation4], 1 }
 0x448   :  { %1125 = vsyncpa [#allocation5], 1 }

// kernel: tpu_custom_call.1
= control target key start
LH: loop header
LB: loop body
LE: loop exit
PB: predicated region body
PF: predicated region fallthrough
CT: control target
= control target key end

     0   :  { %s1892_s0 = inlined_call_operand.vmem [shape: s32[1,128], index: 0, kind: input, shape index: {}]   ;;  %s1893_s1 = inlined_call_operand.vmem [shape: s32[1,128], index: 1, kind: input, shape index: {}]   ;;  %s1894_s2 = inlined_call_operand.hbm [shape: bf16[128,384], index: 2, kind: input, shape index: {}]   ;;  %s1895_s3 = inlined_call_operand.vmem [shape: bf16[64,128], index: 3, kind: input, shape index: {}]   ;;  %s1896_s4 = inlined_call_operand.vmem [shape: f32[64,1], index: 4, kind: input, shape index: {}]   ;;  %s1897_s5 = inlined_call_operand.vmem [shape: bf16[32,64], index: 5, kind: input, shape index: {}]   ;;  %s1898_s6 = inlined_call_operand.vmem [shape: f32[32,1], index: 6, kind: input, shape index: {}]   ;;  %s1899_s7 = inlined_call_operand.vmem [shape: bf16[16,32], index: 7, kind: input, shape index: {}]   ;;  %s1900_s8 = inlined_call_operand.vmem [shape: f32[16,1], index: 8, kind: input, shape index: {}]   ;;  %s1901_s9 = inlined_call_operand.vmem [shape: f32[16,1], index: 9, kind: input, shape index: {}]   ;;  %s1902_s10 = inlined_call_operand.<no memory space> [shape: f32[1,1], index: 10, kind: input, shape index: {}]   ;;  %s1903_s11 = inlined_call_operand.hbm [shape: f32[1,128], index: 11, kind: output, shape index: {}]  }
   0x1   :  { %v16_v0 = vstv %s1902_s10 }
   0x2   :  { %17 = vst [vmem:[#allocation2] sm:$0x1] %v16_v0 }
   0x3   :  { %18 = vsyncpa [#allocation4], 0 }
   0x4   :  { %19 = vsyncpa [#allocation5], 0  ;;  %s1532_s19 = smov [#allocation3]   ;;  %s1484_s23 = scalar_lea.hbm %s1894_s2, 3072 }
   0x5   :  { %s29_s20 = sshll.u32 %s1532_s19, 4  ;;  %p1485_p0 = scmp.ne.s32.totalorder %s1894_s2, %s1484_s23  ;;  %s30_s20 = int_to_ptr.vmem [resolvable:$true] %s29_s20 }
   0x6   :  { %p1488_p1 = scmp.lt.u32.totalorder %s1484_s23, %s1894_s2 }
   0x8   :  { %p1490_p2 = pnand %p1488_p1, %p1485_p0 }
   0xa   :  { %1493 = shalt.err (!%p1490_p2)
}
   0xb   :  { %s1494_s10 = scalar_lea.vmem %s30_s20, 3072  ;;  %p1499_p4 = scmp.lt.s32.totalorder %s30_s20, %s30_s20 }
   0xc   :  { %p1495_p3 = scmp.ne.s32.totalorder %s30_s20, %s1494_s10  ;;  %p1500_p5 = scmp.lt.s32.totalorder %s1494_s10, %s1494_s10 }
   0xe   :  { %p1501_p6 = por %p1500_p5, %p1499_p4 }
  0x10   :  { %p1502_p7 = pnand %p1501_p6, %p1495_p3 }
  0x12   :  { %1505 = shalt.err (!%p1502_p7)
}
  0x13   :  { %s1533_s28 = smov 192   ;;  %s1534_s29 = smov 12  }
  0x14   :  { %35 = dma.hbm_to_vmem [thread:$0]  %s1894_s2, 3072, %s30_s20, [#allocation4], %s1533_s28, %s1533_s28, %s1534_s29  }
  0x15   :  { %1528 = dma.done.wait [#allocation4], 3072  }
  0x16   :  { %1529 = vsyncadd [#allocation4], 4294964224  ;;  %v58_v1 = vlaneseq  ;;  %v1623_v6 = vld [vmem:[%s1892_s0] ss:$0 sm:$0xff]  ;;  %v1447_v10 = vld [vmem:[#allocation3 + $0x4] ss:$12 sps:$4 sm:$0xff]  }
  0x17   :  { %v1628_v7 = vld [vmem:[%s1893_s1] ss:$0 sm:$0xff]  ;;  %v1448_v11 = vld [vmem:[#allocation3 + $0x8] ss:$12 sps:$4 sm:$0xff]   ;;  %571 = vmatprep.mubr.bf16.mxu0 %v1447_v10  ;;  %v1535_v13 = vmov 1.0|1.0  }
  0x18   :  { %v1615_v2 = vshrl.u32 %v58_v1, 7  ;;  %1375 = vmatprep.mubr.bf16.mxu1 %v1448_v11  ;;  %v1445_v55 = vld [vmem:[#allocation3] ss:$12 sps:$4 sm:$0xff]   ;;  %v1450_v56 = vld [vmem:[#allocation3 + $0x1c] ss:$12 sps:$4 sm:$0xff]  }
  0x19   :  { %v1449_v57 = vld [vmem:[#allocation3 + $0x20] ss:$12 sps:$4 sm:$0xff]   ;;  %v1456_v58 = vld [vmem:[#allocation3 + $0x38] ss:$12 sps:$4 sm:$0xff]   ;;  %v1457_v61 = vld [vmem:[#allocation3 + $0x50] ss:$12 sps:$4 sm:$0xff]  }
  0x1a   :  { %v75_v3 = vadd.s32 128, %v1615_v2  ;;  %v76_v4 = vadd.s32 136, %v1615_v2  ;;  %v60_v5 = vadd.s32 8, %v1615_v2  ;;  %v91_v8 = vadd.s32 256, %v1615_v2  ;;  %v1452_v59 = vld [vmem:[#allocation3 + $0x18] ss:$12 sps:$4 sm:$0xff]  }
  0x1b   :  { %vm111_vm5 = vcmp.eq.s32.totalorder %v1615_v2, %v1623_v6  ;;  %vm163_vm6 = vcmp.eq.s32.totalorder %v1615_v2, %v1628_v7  ;;  %v92_v9 = vadd.s32 264, %v1615_v2  ;;  %v77_v12 = vadd.s32 144, %v1615_v2  ;;  %v1453_v60 = vld [vmem:[#allocation3 + $0x34] ss:$12 sps:$4 sm:$0xff]   ;;  %v1455_v63 = vld [vmem:[#allocation3 + $0x30] ss:$12 sps:$4 sm:$0xff]  }
  0x1c   :  { %vm127_vm0 = vcmp.eq.s32.totalorder %v75_v3, %v1623_v6  ;;  %vm128_vm1 = vcmp.eq.s32.totalorder %v76_v4, %v1623_v6  ;;  %vm179_vm2 = vcmp.eq.s32.totalorder %v75_v3, %v1628_v7  ;;  %vm180_vm3 = vcmp.eq.s32.totalorder %v76_v4, %v1628_v7  ;;  %vm211_vm11 = vmor %vm111_vm5, %vm163_vm6  ;;  %v1464_v62 = vld [vmem:[#allocation3 + $0x68] ss:$12 sps:$4 sm:$0xff]   ;;  %v1458_v0 = vld [vmem:[#allocation3 + $0x4c] ss:$12 sps:$4 sm:$0xff]  }
  0x1d   :  { %vm227_vm4 = vmor %vm127_vm0, %vm179_vm2  ;;  %vm112_vm8 = vcmp.eq.s32.totalorder %v60_v5, %v1623_v6  ;;  %vm164_vm9 = vcmp.eq.s32.totalorder %v60_v5, %v1628_v7  ;;  %vm143_vm12 = vcmp.eq.s32.totalorder %v91_v8, %v1623_v6  ;;  %vm195_vm13 = vcmp.eq.s32.totalorder %v91_v8, %v1628_v7  ;;  %v1465_v1 = vld [vmem:[#allocation3 + $0x80] ss:$12 sps:$4 sm:$0xff]   ;;  %v1472_v3 = vld [vmem:[#allocation3 + $0x98] ss:$12 sps:$4 sm:$0xff]  }
  0x1e   :  { %vm228_vm7 = vmor %vm128_vm1, %vm180_vm3  ;;  %v78_v14 = vadd.s32 152, %v1615_v2  ;;  %vm144_vm15 = vcmp.eq.s32.totalorder %v92_v9, %v1623_v6  ;;  %vm196_vm0 = vcmp.eq.s32.totalorder %v92_v9, %v1628_v7  ;;  %v61_v15 = vadd.s32 16, %v1615_v2  ;;  %v1460_v4 = vld [vmem:[#allocation3 + $0x48] ss:$12 sps:$4 sm:$0xff]   ;;  %v1461_v5 = vld [vmem:[#allocation3 + $0x64] ss:$12 sps:$4 sm:$0xff]  }
  0x1f   :  { %vm1216_vm10 = vmpackc.low %vm228_vm7, %vm227_vm4  ;;  %vm129_vm3 = vcmp.eq.s32.totalorder %v77_v12, %v1623_v6  ;;  %vm181_vm4 = vcmp.eq.s32.totalorder %v77_v12, %v1628_v7  ;;  %v62_v16 = vadd.s32 24, %v1615_v2  ;;  %v93_v17 = vadd.s32 272, %v1615_v2  ;;  %v1466_v8 = vld [vmem:[#allocation3 + $0x7c] ss:$12 sps:$4 sm:$0xff]   ;;  %v1468_v9 = vld [vmem:[#allocation3 + $0x78] ss:$12 sps:$4 sm:$0xff]  }
  0x20   :  { %1258 = vmatprep.subr.msk.bf16.mxu0 %vm1216_vm10, %v1535_v13  ;;  %vm212_vm14 = vmor %vm112_vm8, %vm164_vm9  ;;  %vm130_vm6 = vcmp.eq.s32.totalorder %v78_v14, %v1623_v6  ;;  %vm182_vm7 = vcmp.eq.s32.totalorder %v78_v14, %v1628_v7  ;;  %vm113_vm10 = vcmp.eq.s32.totalorder %v61_v15, %v1623_v6  ;;  %v94_v18 = vadd.s32 280, %v1615_v2  ;;  %v1469_v10 = vld [vmem:[#allocation3 + $0x94] ss:$12 sps:$4 sm:$0xff]   ;;  %v1471_v11 = vld [vmem:[#allocation3 + $0x90] ss:$12 sps:$4 sm:$0xff]  }
  0x21   :  { %vm1200_vm1 = vmpackc.low %vm212_vm14, %vm211_vm11  ;;  %vm165_vm11 = vcmp.eq.s32.totalorder %v61_v15, %v1628_v7  ;;  %vm166_vm14 = vcmp.eq.s32.totalorder %v62_v16, %v1628_v7  ;;  %v79_v19 = vadd.s32 160, %v1615_v2  ;;  %v80_v20 = vadd.s32 168, %v1615_v2  ;;  %v1474_v12 = vld [vmem:[#allocation3 + $0xac] ss:$12 sps:$4 sm:$0xff]   ;;  %v1477_v14 = vld [vmem:[%s1895_s3] sm:$0xff]  }
  0x22   :  { %1259 = vmatpush3.bf16.msk.msra.mxu0 %vm1200_vm1, %v1535_v13  ;;  %vm243_vm2 = vmor %vm143_vm12, %vm195_vm13  ;;  %vm114_vm13 = vcmp.eq.s32.totalorder %v62_v16, %v1623_v6  ;;  %vm145_vm1 = vcmp.eq.s32.totalorder %v93_v17, %v1623_v6  ;;  %v63_v21 = vadd.s32 32, %v1615_v2  ;;  %v64_v22 = vadd.s32 40, %v1615_v2  ;;  %v762_v15 = vld [vmem:[%s1896_s4] sm:$0xff]  ;;  %v764_v16 = vld [vmem:[%s1896_s4 + $0x10] sm:$0xff] }
  0x23   :  { %vm244_vm5 = vmor %vm144_vm15, %vm196_vm0  ;;  %v95_v23 = vadd.s32 288, %v1615_v2  ;;  %v96_v24 = vadd.s32 296, %v1615_v2  ;;  %v81_v25 = vadd.s32 176, %v1615_v2  ;;  %v82_v26 = vadd.s32 184, %v1615_v2 }
  0x24   :  { %vm1232_vm8 = vmpackc.low %vm244_vm5, %vm243_vm2  ;;  %vm197_vm2 = vcmp.eq.s32.totalorder %v93_v17, %v1628_v7  ;;  %vm198_vm5 = vcmp.eq.s32.totalorder %v94_v18, %v1628_v7  ;;  %v65_v27 = vadd.s32 48, %v1615_v2  ;;  %v66_v28 = vadd.s32 56, %v1615_v2 }
  0x25   :  { %1359 = vmatprep.subr.msk.bf16.mxu1 %vm1232_vm8, %v1535_v13  ;;  %vm229_vm9 = vmor %vm129_vm3, %vm181_vm4  ;;  %vm146_vm4 = vcmp.eq.s32.totalorder %v94_v18, %v1623_v6  ;;  %v97_v29 = vadd.s32 304, %v1615_v2  ;;  %v98_v30 = vadd.s32 312, %v1615_v2  ;;  %v83_v31 = vadd.s32 192, %v1615_v2  ;;  %v763_v18 = vld [vmem:[%s1896_s4 + $0x8] sm:$0xff] }
  0x26   :  { %1360 = vmatpush3.bf16.msk.msra.mxu1 %vm1232_vm8, %v1535_v13  ;;  %vm230_vm12 = vmor %vm130_vm6, %vm182_vm7  ;;  %vm131_vm8 = vcmp.eq.s32.totalorder %v79_v19, %v1623_v6  ;;  %v84_v32 = vadd.s32 200, %v1615_v2  ;;  %v67_v33 = vadd.s32 64, %v1615_v2  ;;  %v68_v34 = vadd.s32 72, %v1615_v2 }
  0x27   :  { %vm1218_vm15 = vmpackc.low %vm230_vm12, %vm229_vm9  ;;  %vm183_vm9 = vcmp.eq.s32.totalorder %v79_v19, %v1628_v7  ;;  %vm184_vm12 = vcmp.eq.s32.totalorder %v80_v20, %v1628_v7  ;;  %v99_v35 = vadd.s32 320, %v1615_v2  ;;  %v100_v36 = vadd.s32 328, %v1615_v2  ;;  %v765_v19 = vld [vmem:[%s1896_s4 + $0x18] sm:$0xff] }
  0x28   :  { %1260 = vmatprep.subr.msk.bf16.mxu0 %vm1218_vm15, %v1535_v13  ;;  %vm213_vm0 = vmor %vm113_vm10, %vm165_vm11  ;;  %vm132_vm11 = vcmp.eq.s32.totalorder %v80_v20, %v1623_v6  ;;  %vm115_vm15 = vcmp.eq.s32.totalorder %v63_v21, %v1623_v6  ;;  %v85_v37 = vadd.s32 208, %v1615_v2  ;;  %v86_v38 = vadd.s32 216, %v1615_v2  ;;  %v766_v20 = vld [vmem:[%s1896_s4 + $0x20] sm:$0xff] }
  0x29   :  { %vm214_vm3 = vmor %vm114_vm13, %vm166_vm14  ;;  %v69_v39 = vadd.s32 80, %v1615_v2  ;;  %v70_v40 = vadd.s32 88, %v1615_v2  ;;  %v101_v41 = vadd.s32 336, %v1615_v2  ;;  %v102_v42 = vadd.s32 344, %v1615_v2 }
  0x2a   :  { %vm1202_vm6 = vmpackc.low %vm214_vm3, %vm213_vm0  ;;  %vm167_vm0 = vcmp.eq.s32.totalorder %v63_v21, %v1628_v7  ;;  %vm168_vm3 = vcmp.eq.s32.totalorder %v64_v22, %v1628_v7  ;;  %v87_v43 = vadd.s32 224, %v1615_v2  ;;  %v88_v44 = vadd.s32 232, %v1615_v2  ;;  %v767_v21 = vld [vmem:[%s1896_s4 + $0x28] sm:$0xff] }
  0x2b   :  { %1261 = vmatpush3.bf16.msk.msra.mxu0 %vm1202_vm6, %v1535_v13  ;;  %vm245_vm7 = vmor %vm145_vm1, %vm197_vm2  ;;  %vm116_vm2 = vcmp.eq.s32.totalorder %v64_v22, %v1623_v6  ;;  %vm147_vm6 = vcmp.eq.s32.totalorder %v95_v23, %v1623_v6  ;;  %v71_v45 = vadd.s32 96, %v1615_v2  ;;  %v72_v46 = vadd.s32 104, %v1615_v2  ;;  %v768_v22 = vld [vmem:[%s1896_s4 + $0x30] sm:$0xff] }
  0x2c   :  { %vm246_vm10 = vmor %vm146_vm4, %vm198_vm5  ;;  %v103_v47 = vadd.s32 352, %v1615_v2  ;;  %v104_v48 = vadd.s32 360, %v1615_v2  ;;  %v89_v49 = vadd.s32 240, %v1615_v2  ;;  %v90_v50 = vadd.s32 248, %v1615_v2 }
  0x2d   :  { %vm1234_vm13 = vmpackc.low %vm246_vm10, %vm245_vm7  ;;  %vm199_vm7 = vcmp.eq.s32.totalorder %v95_v23, %v1628_v7  ;;  %vm200_vm10 = vcmp.eq.s32.totalorder %v96_v24, %v1628_v7  ;;  %v73_v51 = vadd.s32 112, %v1615_v2  ;;  %v74_v52 = vadd.s32 120, %v1615_v2  ;;  %v769_v23 = vld [vmem:[%s1896_s4 + $0x38] sm:$0xff] }
  0x2e   :  { %1361 = vmatprep.subr.msk.bf16.mxu1 %vm1234_vm13, %v1535_v13  ;;  %vm231_vm14 = vmor %vm131_vm8, %vm183_vm9  ;;  %vm148_vm9 = vcmp.eq.s32.totalorder %v96_v24, %v1623_v6  ;;  %v105_v53 = vadd.s32 368, %v1615_v2  ;;  %v106_v54 = vadd.s32 376, %v1615_v2  ;;  %v1536_v17 = vmov 0   ;;  %v915_v24 = vld [vmem:[%s1898_s6] sm:$0xff] }
  0x2f   :  { %1362 = vmatpush3.bf16.msk.msra.mxu1 %vm1234_vm13, %v1535_v13  ;;  %vm232_vm1 = vmor %vm132_vm11, %vm184_vm12  ;;  %vm133_vm13 = vcmp.eq.s32.totalorder %v81_v25, %v1623_v6  ;;  %1443 = vset.pattern.permute.xlu0 %v1536_v17 }
  0x30   :  { %vm1220_vm4 = vmpackc.low %vm232_vm1, %vm231_vm14  ;;  %vm185_vm14 = vcmp.eq.s32.totalorder %v81_v25, %v1628_v7  ;;  %vm186_vm1 = vcmp.eq.s32.totalorder %v82_v26, %v1628_v7  ;;  %1444 = vset.pattern.permute.xlu1 %v1536_v17  ;;  %772 = vperm.xlu0 %1443, %v762_v15   ;;  %v916_v25 = vld [vmem:[%s1898_s6 + $0x8] sm:$0xff] }
  0x31   :  { %1262 = vmatprep.subr.msk.bf16.mxu0 %vm1220_vm4, %v1535_v13  ;;  %vm215_vm5 = vmor %vm115_vm15, %vm167_vm0  ;;  %vm134_vm0 = vcmp.eq.s32.totalorder %v82_v26, %v1623_v6  ;;  %vm117_vm4 = vcmp.eq.s32.totalorder %v65_v27, %v1623_v6  ;;  %782 = vperm.xlu1 %1444, %v764_v16   ;;  %v917_v26 = vld [vmem:[%s1898_s6 + $0x10] sm:$0xff] }
  0x32   :  { %vm216_vm8 = vmor %vm116_vm2, %vm168_vm3 }
  0x33   :  { %vm1204_vm11 = vmpackc.low %vm216_vm8, %vm215_vm5  ;;  %vm169_vm5 = vcmp.eq.s32.totalorder %v65_v27, %v1628_v7  ;;  %vm170_vm8 = vcmp.eq.s32.totalorder %v66_v28, %v1628_v7  ;;  %v918_v27 = vld [vmem:[%s1898_s6 + $0x18] sm:$0xff] }
  0x34   :  { %1263 = vmatpush3.bf16.msk.msra.mxu0 %vm1204_vm11, %v1535_v13  ;;  %vm247_vm12 = vmor %vm147_vm6, %vm199_vm7  ;;  %vm118_vm7 = vcmp.eq.s32.totalorder %v66_v28, %v1623_v6  ;;  %vm149_vm11 = vcmp.eq.s32.totalorder %v97_v29, %v1623_v6  ;;  %777 = vperm.xlu0 %1443, %v763_v18   ;;  %v1013_v28 = vld [vmem:[%s1900_s8] sm:$0xff] }
  0x35   :  { %vm248_vm15 = vmor %vm148_vm9, %vm200_vm10  ;;  %787 = vperm.xlu1 %1444, %v765_v19  }
  0x36   :  { %vm1236_vm2 = vmpackc.low %vm248_vm15, %vm247_vm12  ;;  %vm201_vm12 = vcmp.eq.s32.totalorder %v97_v29, %v1628_v7  ;;  %vm202_vm15 = vcmp.eq.s32.totalorder %v98_v30, %v1628_v7  ;;  %v1014_v29 = vld [vmem:[%s1900_s8 + $0x8] sm:$0xff] }
  0x37   :  { %1363 = vmatprep.subr.msk.bf16.mxu1 %vm1236_vm2, %v1535_v13  ;;  %vm233_vm3 = vmor %vm133_vm13, %vm185_vm14  ;;  %vm150_vm14 = vcmp.eq.s32.totalorder %v98_v30, %v1623_v6  ;;  %v1077_v30 = vld [vmem:[%s1901_s9] sm:$0xff] }
  0x38   :  { %1364 = vmatpush3.bf16.msk.msra.mxu1 %vm1236_vm2, %v1535_v13  ;;  %vm234_vm6 = vmor %vm134_vm0, %vm186_vm1  ;;  %vm135_vm2 = vcmp.eq.s32.totalorder %v83_v31, %v1623_v6  ;;  %792 = vperm.xlu0 %1443, %v766_v20  }
  0x39   :  { %vm1222_vm9 = vmpackc.low %vm234_vm6, %vm233_vm3  ;;  %vm187_vm3 = vcmp.eq.s32.totalorder %v83_v31, %v1628_v7  ;;  %vm188_vm6 = vcmp.eq.s32.totalorder %v84_v32, %v1628_v7  ;;  %797 = vperm.xlu1 %1444, %v767_v21   ;;  %v1078_v31 = vld [vmem:[%s1901_s9 + $0x8] sm:$0xff] }
  0x3a   :  { %1264 = vmatprep.subr.msk.bf16.mxu0 %vm1222_vm9, %v1535_v13  ;;  %vm217_vm10 = vmor %vm117_vm4, %vm169_vm5  ;;  %vm136_vm5 = vcmp.eq.s32.totalorder %v84_v32, %v1623_v6  ;;  %vm119_vm9 = vcmp.eq.s32.totalorder %v67_v33, %v1623_v6  ;;  %v1099_v32 = vld [vmem:[#allocation2] sm:$0x1] }
  0x3b   :  { %vm218_vm13 = vmor %vm118_vm7, %vm170_vm8 }
  0x3c   :  { %vm1206_vm0 = vmpackc.low %vm218_vm13, %vm217_vm10  ;;  %vm171_vm10 = vcmp.eq.s32.totalorder %v67_v33, %v1628_v7  ;;  %vm172_vm13 = vcmp.eq.s32.totalorder %v68_v34, %v1628_v7  ;;  %802 = vperm.xlu0 %1443, %v768_v22  }
  0x3d   :  { %1265 = vmatpush3.bf16.msk.msra.mxu0 %vm1206_vm0, %v1535_v13  ;;  %vm249_vm1 = vmor %vm149_vm11, %vm201_vm12  ;;  %vm120_vm12 = vcmp.eq.s32.totalorder %v68_v34, %v1623_v6  ;;  %vm151_vm0 = vcmp.eq.s32.totalorder %v99_v35, %v1623_v6  ;;  %807 = vperm.xlu1 %1444, %v769_v23  }
  0x3e   :  { %vm250_vm4 = vmor %vm150_vm14, %vm202_vm15 }
  0x3f   :  { %vm1238_vm7 = vmpackc.low %vm250_vm4, %vm249_vm1  ;;  %vm203_vm1 = vcmp.eq.s32.totalorder %v99_v35, %v1628_v7  ;;  %vm204_vm4 = vcmp.eq.s32.totalorder %v100_v36, %v1628_v7 }
  0x40   :  { %1365 = vmatprep.subr.msk.bf16.mxu1 %vm1238_vm7, %v1535_v13  ;;  %vm235_vm8 = vmor %vm135_vm2, %vm187_vm3  ;;  %vm152_vm3 = vcmp.eq.s32.totalorder %v100_v36, %v1623_v6  ;;  %921 = vperm.xlu0 %1443, %v915_v24  }
  0x41   :  { %1366 = vmatpush3.bf16.msk.msra.mxu1 %vm1238_vm7, %v1535_v13  ;;  %vm236_vm11 = vmor %vm136_vm5, %vm188_vm6  ;;  %vm137_vm7 = vcmp.eq.s32.totalorder %v85_v37, %v1623_v6  ;;  %926 = vperm.xlu1 %1444, %v916_v25  }
  0x42   :  { %vm1224_vm14 = vmpackc.low %vm236_vm11, %vm235_vm8  ;;  %vm189_vm8 = vcmp.eq.s32.totalorder %v85_v37, %v1628_v7  ;;  %vm190_vm11 = vcmp.eq.s32.totalorder %v86_v38, %v1628_v7 }
  0x43   :  { %1266 = vmatprep.subr.msk.bf16.mxu0 %vm1224_vm14, %v1535_v13  ;;  %vm219_vm15 = vmor %vm119_vm9, %vm171_vm10  ;;  %vm138_vm10 = vcmp.eq.s32.totalorder %v86_v38, %v1623_v6  ;;  %vm121_vm14 = vcmp.eq.s32.totalorder %v69_v39, %v1623_v6 }
  0x44   :  { %vm220_vm2 = vmor %vm120_vm12, %vm172_vm13  ;;  %931 = vperm.xlu0 %1443, %v917_v26  }
  0x45   :  { %vm1208_vm5 = vmpackc.low %vm220_vm2, %vm219_vm15  ;;  %vm173_vm15 = vcmp.eq.s32.totalorder %v69_v39, %v1628_v7  ;;  %vm174_vm2 = vcmp.eq.s32.totalorder %v70_v40, %v1628_v7  ;;  %936 = vperm.xlu1 %1444, %v918_v27  }
  0x46   :  { %1267 = vmatpush3.bf16.msk.msra.mxu0 %vm1208_vm5, %v1535_v13  ;;  %vm251_vm6 = vmor %vm151_vm0, %vm203_vm1  ;;  %vm122_vm1 = vcmp.eq.s32.totalorder %v70_v40, %v1623_v6  ;;  %vm153_vm5 = vcmp.eq.s32.totalorder %v101_v41, %v1623_v6 }
  0x47   :  { %vm252_vm9 = vmor %vm152_vm3, %vm204_vm4 }
  0x48   :  { %vm1240_vm12 = vmpackc.low %vm252_vm9, %vm251_vm6  ;;  %vm205_vm6 = vcmp.eq.s32.totalorder %v101_v41, %v1628_v7  ;;  %vm206_vm9 = vcmp.eq.s32.totalorder %v102_v42, %v1628_v7  ;;  %1017 = vperm.xlu0 %1443, %v1013_v28  }
  0x49   :  { %1367 = vmatprep.subr.msk.bf16.mxu1 %vm1240_vm12, %v1535_v13  ;;  %vm237_vm13 = vmor %vm137_vm7, %vm189_vm8  ;;  %vm154_vm8 = vcmp.eq.s32.totalorder %v102_v42, %v1623_v6  ;;  %1022 = vperm.xlu1 %1444, %v1014_v29  }
  0x4a   :  { %1368 = vmatpush3.bf16.msk.msra.mxu1 %vm1240_vm12, %v1535_v13  ;;  %vm238_vm0 = vmor %vm138_vm10, %vm190_vm11  ;;  %vm139_vm12 = vcmp.eq.s32.totalorder %v87_v43, %v1623_v6 }
  0x4b   :  { %vm1226_vm3 = vmpackc.low %vm238_vm0, %vm237_vm13  ;;  %vm191_vm13 = vcmp.eq.s32.totalorder %v87_v43, %v1628_v7  ;;  %vm192_vm0 = vcmp.eq.s32.totalorder %v88_v44, %v1628_v7 }
  0x4c   :  { %1268 = vmatprep.subr.msk.bf16.mxu0 %vm1226_vm3, %v1535_v13  ;;  %vm221_vm4 = vmor %vm121_vm14, %vm173_vm15  ;;  %vm140_vm15 = vcmp.eq.s32.totalorder %v88_v44, %v1623_v6  ;;  %vm123_vm3 = vcmp.eq.s32.totalorder %v71_v45, %v1623_v6  ;;  %1081 = vperm.xlu0 %1443, %v1077_v30  }
  0x4d   :  { %vm222_vm7 = vmor %vm122_vm1, %vm174_vm2  ;;  %1086 = vperm.xlu1 %1444, %v1078_v31  }
  0x4e   :  { %vm1210_vm10 = vmpackc.low %vm222_vm7, %vm221_vm4  ;;  %vm175_vm4 = vcmp.eq.s32.totalorder %v71_v45, %v1628_v7  ;;  %vm176_vm7 = vcmp.eq.s32.totalorder %v72_v46, %v1628_v7 }
  0x4f   :  { %1269 = vmatpush3.bf16.msk.msra.mxu0 %vm1210_vm10, %v1535_v13  ;;  %vm253_vm11 = vmor %vm153_vm5, %vm205_vm6  ;;  %vm124_vm6 = vcmp.eq.s32.totalorder %v72_v46, %v1623_v6  ;;  %vm155_vm10 = vcmp.eq.s32.totalorder %v103_v47, %v1623_v6 }
  0x50   :  { %vm254_vm14 = vmor %vm154_vm8, %vm206_vm9  ;;  %1102 = vperm.xlu0 %1443, %v1099_v32  }
  0x51   :  { %vm1242_vm1 = vmpackc.low %vm254_vm14, %vm253_vm11  ;;  %vm207_vm11 = vcmp.eq.s32.totalorder %v103_v47, %v1628_v7  ;;  %vm208_vm14 = vcmp.eq.s32.totalorder %v104_v48, %v1628_v7 }
  0x52   :  { %1369 = vmatprep.subr.msk.bf16.mxu1 %vm1242_vm1, %v1535_v13  ;;  %vm239_vm2 = vmor %vm139_vm12, %vm191_vm13  ;;  %vm156_vm13 = vcmp.eq.s32.totalorder %v104_v48, %v1623_v6 }
  0x53   :  { %1370 = vmatpush3.bf16.msk.msra.mxu1 %vm1242_vm1, %v1535_v13  ;;  %vm240_vm5 = vmor %vm140_vm15, %vm192_vm0  ;;  %vm141_vm1 = vcmp.eq.s32.totalorder %v89_v49, %v1623_v6 }
  0x54   :  { %vm1228_vm8 = vmpackc.low %vm240_vm5, %vm239_vm2  ;;  %vm193_vm2 = vcmp.eq.s32.totalorder %v89_v49, %v1628_v7  ;;  %vm194_vm5 = vcmp.eq.s32.totalorder %v90_v50, %v1628_v7 }
  0x55   :  { %1270 = vmatprep.subr.msk.bf16.mxu0 %vm1228_vm8, %v1535_v13  ;;  %vm223_vm9 = vmor %vm123_vm3, %vm175_vm4  ;;  %vm142_vm4 = vcmp.eq.s32.totalorder %v90_v50, %v1623_v6  ;;  %vm125_vm8 = vcmp.eq.s32.totalorder %v73_v51, %v1623_v6 }
  0x56   :  { %vm224_vm12 = vmor %vm124_vm6, %vm176_vm7 }
  0x57   :  { %vm1212_vm15 = vmpackc.low %vm224_vm12, %vm223_vm9  ;;  %vm177_vm9 = vcmp.eq.s32.totalorder %v73_v51, %v1628_v7  ;;  %vm178_vm12 = vcmp.eq.s32.totalorder %v74_v52, %v1628_v7 }
  0x58   :  { %1271 = vmatpush3.bf16.msk.msra.mxu0 %vm1212_vm15, %v1535_v13  ;;  %vm255_vm0 = vmor %vm155_vm10, %vm207_vm11  ;;  %vm126_vm11 = vcmp.eq.s32.totalorder %v74_v52, %v1623_v6  ;;  %vm157_vm15 = vcmp.eq.s32.totalorder %v105_v53, %v1623_v6 }
  0x59   :  { %vm256_vm3 = vmor %vm156_vm13, %vm208_vm14 }
  0x5a   :  { %vm1244_vm6 = vmpackc.low %vm256_vm3, %vm255_vm0  ;;  %vm209_vm0 = vcmp.eq.s32.totalorder %v105_v53, %v1628_v7  ;;  %vm210_vm3 = vcmp.eq.s32.totalorder %v106_v54, %v1628_v7  ;;  %v1463_v7 = vld [vmem:[#allocation3 + $0x60] ss:$12 sps:$4 sm:$0xff]  }
  0x5b   :  { %1371 = vmatprep.subr.msk.bf16.mxu1 %vm1244_vm6, %v1535_v13  ;;  %vm241_vm7 = vmor %vm141_vm1, %vm193_vm2  ;;  %vm158_vm2 = vcmp.eq.s32.totalorder %v106_v54, %v1623_v6  ;;  %v1473_v6 = vld [vmem:[#allocation3 + $0xb0] ss:$12 sps:$4 sm:$0xff]  }
  0x5c   :  { %1372 = vmatpush3.bf16.msk.msra.mxu1 %vm1244_vm6, %v1535_v13  ;;  %vm242_vm10 = vmor %vm142_vm4, %vm194_vm5 }
  0x5d   :  { %vm1230_vm13 = vmpackc.low %vm242_vm10, %vm241_vm7  ;;  %vm1030_vm10 = vcmask 261120  }
  0x5e   :  { %1272 = vmatprep.subr.msk.bf16.mxu0 %vm1230_vm13, %v1535_v13  ;;  %vm225_vm14 = vmor %vm125_vm8, %vm177_vm9  ;;  %vm949_vm8 = vcmask 523264   ;;  %vm1538_vm9 = vmmov 0  }
  0x5f   :  { %vm226_vm1 = vmor %vm126_vm11, %vm178_vm12 }
  0x60   :  { %vm1214_vm6 = vmpackc.low %vm226_vm1, %vm225_vm14 }
  0x61   :  { %1273 = vmatpush3.bf16.msk.msra.mxu0 %vm1214_vm6, %v1535_v13  ;;  %vm257_vm4 = vmor %vm157_vm15, %vm209_vm0 }
  0x62   :  { %vm258_vm5 = vmor %vm158_vm2, %vm210_vm3 }
  0x63   :  { %vm1246_vm7 = vmpackc.low %vm258_vm5, %vm257_vm4 }
  0x64   :  { %1373 = vmatprep.subr.msk.bf16.mxu1 %vm1246_vm7, %v1535_v13  ;;  %572 = vmatmul.mubr.bf16.vlgmr.msra.gmra.mrb[0].mxu0 %v1445_v55 }
  0x65   :  { %1374 = vmatpush3.bf16.msk.msra.mxu1 %vm1246_vm7, %v1535_v13  ;;  %579 = vmatprep.mubr.bf16.mxu0 %v1450_v56  ;;  %v1476_v13 = vld [vmem:[#allocation3 + $0xa8] ss:$12 sps:$4 sm:$0xff]  }
  0x68   :  { %1376 = vmatmul.mubr.bf16.vlgmr.msra.gmra.mrb[0].mxu1 %v1449_v57 }
  0x69   :  { %1379 = vmatprep.mubr.bf16.mxu1 %v1456_v58 }
  0x6c   :  { %580 = vmatmul.mubr.bf16.gmra.mrb[4].mxu0 %v1452_v59 }
  0x6d   :  { %587 = vmatprep.mubr.bf16.mxu0 %v1453_v60 }
  0x70   :  { %1380 = vmatmul.mubr.bf16.gmra.mrb[4].mxu1 %v1457_v61 }
  0x71   :  { %1383 = vmatprep.mubr.bf16.mxu1 %v1464_v62 }
  0x74   :  { %588 = vmatmul.mubr.bf16.gmra.mrb[8].mxu0 %v1455_v63 }
  0x75   :  { %595 = vmatprep.mubr.bf16.mxu0 %v1458_v0 }
  0x78   :  { %1384 = vmatmul.mubr.bf16.gmra.mrb[8].mxu1 %v1465_v1 }
  0x79   :  { %1387 = vmatprep.mubr.bf16.mxu1 %v1472_v3 }
  0x7c   :  { %596 = vmatmul.mubr.bf16.gmra.mrb[12].mxu0 %v1460_v4 }
  0x7d   :  { %603 = vmatprep.mubr.bf16.mxu0 %v1461_v5 }
  0x80   :  { %1388 = vmatmul.mubr.bf16.gmra.mrb[12].mxu1 %v1473_v6 }
  0x81   :  { %1407 = vmatprep.mubr.bf16.mxu1 %v1477_v14 }
  0x84   :  { %604 = vmatmul.mubr.bf16.gmra.mrb[16].mxu0 %v1463_v7 }
  0x85   :  { %611 = vmatprep.mubr.bf16.mxu0 %v1466_v8 }
  0x8c   :  { %612 = vmatmul.mubr.bf16.gmra.mrb[20].mxu0 %v1468_v9 }
  0x8d   :  { %619 = vmatprep.mubr.bf16.mxu0 %v1469_v10 }
  0x94   :  { %620 = vmatmul.mubr.bf16.gmra.mrb[24].mxu0 %v1471_v11 }
  0x95   :  { %627 = vmatprep.mubr.bf16.mxu0 %v1474_v12 }
  0x9c   :  { %628 = vmatmul.mubr.bf16.gmra.mrb[28].mxu0 %v1476_v13 }
 0x137   :  { %v1274_v33 = vpop.f32.mrb[0].mxu0 }
 0x138   :  { %v1275_v34 = vpop.f32.mrb[1].mxu0 }
 0x139   :  { %v1276_v35 = vadd.f32 %v1275_v34, %v1274_v33  ;;  %v1277_v36 = vpop.f32.mrb[2].mxu0 }
 0x13a   :  { %v1278_v37 = vpop.f32.mrb[3].mxu0 }
 0x13b   :  { %v1377_v38 = vpop.f32.mrb[0].mxu1  ;;  %v1279_v39 = vadd.f32 %v1278_v37, %v1277_v36 }
 0x13c   :  { %v670_v40 = vpop.f32.mrb[1].mxu1 }
 0x13d   :  { %v671_v41 = vadd.f32 %v1276_v35, %v670_v40  ;;  %v1378_v42 = vpop.f32.mrb[2].mxu1 }
 0x13e   :  { %v673_v43 = vpop.f32.mrb[3].mxu1 }
 0x13f   :  { %v674_v44 = vadd.f32 %v1279_v39, %v673_v43  ;;  %v1280_v45 = vpop.f32.mrb[4].mxu0 }
 0x140   :  { %v1281_v46 = vpop.f32.mrb[5].mxu0 }
 0x141   :  { %v754_v47 = vpack.c.bf16 %v674_v44, %v671_v41  ;;  %v1282_v48 = vadd.f32 %v1281_v46, %v1280_v45  ;;  %v1283_v49 = vpop.f32.mrb[6].mxu0 }
 0x142   :  { %v1284_v50 = vpop.f32.mrb[7].mxu0 }
 0x143   :  { %v679_v51 = vadd.f32 %v1377_v38, %v1282_v48  ;;  %1391 = vmatprep.subr.bf16.mxu1 %v754_v47  ;;  %v1285_v52 = vadd.f32 %v1284_v50, %v1283_v49  ;;  %v1381_v53 = vpop.f32.mrb[4].mxu1 }
 0x144   :  { %1392 = vmatpush3.bf16.msra.mxu1 %v754_v47  ;;  %v686_v54 = vpop.f32.mrb[5].mxu1 }
 0x145   :  { %v682_v55 = vadd.f32 %v1378_v42, %v1285_v52  ;;  %v1382_v56 = vpop.f32.mrb[6].mxu1 }
 0x146   :  { %v689_v57 = vpop.f32.mrb[7].mxu1 }
 0x147   :  { %v1286_v58 = vpop.f32.mrb[8].mxu0  ;;  %v755_v59 = vpack.c.bf16 %v682_v55, %v679_v51 }
 0x148   :  { %v1287_v60 = vpop.f32.mrb[9].mxu0 }
 0x149   :  { %v1288_v61 = vadd.f32 %v1287_v60, %v1286_v58  ;;  %v1289_v62 = vpop.f32.mrb[10].mxu0  ;;  %1393 = vmatprep.subr.bf16.mxu1 %v755_v59 }
 0x14a   :  { %v1290_v63 = vpop.f32.mrb[11].mxu0  ;;  %1394 = vmatpush3.bf16.msra.mxu1 %v755_v59 }
 0x14b   :  { %v1291_v0 = vadd.f32 %v1290_v63, %v1289_v62  ;;  %v687_v1 = vadd.f32 %v1288_v61, %v686_v54  ;;  %v1385_v3 = vpop.f32.mrb[8].mxu1 }
 0x14c   :  { %v702_v4 = vpop.f32.mrb[9].mxu1 }
 0x14d   :  { %v733_v5 = vmul.f32 %v687_v1, %v671_v41  ;;  %v690_v6 = vadd.f32 %v1291_v0, %v689_v57  ;;  %v1386_v7 = vpop.f32.mrb[10].mxu1 }
 0x14e   :  { %v705_v8 = vpop.f32.mrb[11].mxu1 }
 0x14f   :  { %v734_v9 = vmul.f32 %v690_v6, %v674_v44  ;;  %v756_v10 = vpack.c.bf16 %v690_v6, %v687_v1  ;;  %v1292_v11 = vpop.f32.mrb[12].mxu0  ;;  %v1478_v1 = vld [vmem:[%s1895_s3 + $0x8] sm:$0xff]   ;;  %v773_v6 = vpop.permute.xlu0 %772 }
 0x150   :  { %v1293_v12 = vpop.f32.mrb[13].mxu0 }
 0x151   :  { %v737_v13 = vadd.f32 %v734_v9, %v733_v5  ;;  %v1294_v14 = vadd.f32 %v1293_v12, %v1292_v11  ;;  %v1295_v15 = vpop.f32.mrb[14].mxu0  ;;  %1395 = vmatprep.subr.bf16.mxu1 %v756_v10  ;;  %v1481_v5 = vld [vmem:[%s1897_s5] sm:$0xff]  }
 0x152   :  { %v1296_v16 = vpop.f32.mrb[15].mxu0  ;;  %1396 = vmatpush3.bf16.msra.mxu1 %v756_v10 }
 0x153   :  { %v695_v17 = vadd.f32 %v1381_v53, %v1294_v14  ;;  %v1297_v18 = vadd.f32 %v1296_v16, %v1295_v15  ;;  %v1389_v19 = vpop.f32.mrb[12].mxu1 }
 0x154   :  { %v718_v20 = vpop.f32.mrb[13].mxu1 }
 0x155   :  { %v735_v21 = vmul.f32 %v695_v17, %v679_v51  ;;  %v698_v22 = vadd.f32 %v1382_v56, %v1297_v18  ;;  %v1390_v23 = vpop.f32.mrb[14].mxu1 }
 0x156   :  { %v721_v24 = vpop.f32.mrb[15].mxu1 }
 0x157   :  { %v738_v25 = vadd.f32 %v737_v13, %v735_v21  ;;  %v736_v26 = vmul.f32 %v698_v22, %v682_v55  ;;  %v1298_v27 = vpop.f32.mrb[16].mxu0  ;;  %v757_v28 = vpack.c.bf16 %v698_v22, %v695_v17 }
 0x158   :  { %v1299_v29 = vpop.f32.mrb[17].mxu0 }
 0x159   :  { %v1855_v30 = vadd.f32 %v738_v25, %v736_v26  ;;  %v1300_v31 = vadd.f32 %v1299_v29, %v1298_v27  ;;  %v1301_v32 = vpop.f32.mrb[18].mxu0  ;;  %1397 = vmatprep.subr.bf16.mxu1 %v757_v28 }
 0x15a   :  { %v1302_v33 = vpop.f32.mrb[19].mxu0  ;;  %1398 = vmatpush3.bf16.msra.mxu1 %v757_v28 }
 0x15b   :  { %v1303_v34 = vadd.f32 %v1302_v33, %v1301_v32  ;;  %v703_v35 = vadd.f32 %v1300_v31, %v702_v4  ;;  %v1480_v4 = vld [vmem:[%s1895_s3 + $0x18] sm:$0xff]  }
 0x15d   :  { %v706_v36 = vadd.f32 %v1303_v34, %v705_v8  ;;  %v778_v8 = vpop.permute.xlu0 %777 }
 0x15f   :  { %v758_v37 = vpack.c.bf16 %v706_v36, %v703_v35  ;;  %v1304_v38 = vpop.f32.mrb[20].mxu0 }
 0x160   :  { %v1305_v39 = vpop.f32.mrb[21].mxu0 }
 0x161   :  { %v1306_v40 = vadd.f32 %v1305_v39, %v1304_v38  ;;  %v1307_v41 = vpop.f32.mrb[22].mxu0  ;;  %1399 = vmatprep.subr.bf16.mxu1 %v758_v37  ;;  %v793_v13 = vpop.permute.xlu0 %792 }
 0x162   :  { %v1308_v42 = vpop.f32.mrb[23].mxu0  ;;  %1400 = vmatpush3.bf16.msra.mxu1 %v758_v37 }
 0x163   :  { %v711_v43 = vadd.f32 %v1385_v3, %v1306_v40  ;;  %v1309_v44 = vadd.f32 %v1308_v42, %v1307_v41  ;;  %v1479_v3 = vld [vmem:[%s1895_s3 + $0x10] sm:$0xff]  }
 0x165   :  { %v714_v45 = vadd.f32 %v1386_v7, %v1309_v44  ;;  %v783_v7 = vpop.permute.xlu1 %782  ;;  %v803_v25 = vpop.permute.xlu0 %802  ;;  %v1537_v44 = vmov 0.0  }
 0x167   :  { %v1310_v46 = vpop.f32.mrb[24].mxu0  ;;  %v759_v47 = vpack.c.bf16 %v714_v45, %v711_v43  ;;  %v1482_v43 = vld [vmem:[%s1897_s5 + $0x8] sm:$0xff]  }
 0x168   :  { %v1311_v48 = vpop.f32.mrb[25].mxu0 }
 0x169   :  { %v1312_v49 = vadd.f32 %v1311_v48, %v1310_v46  ;;  %v1313_v50 = vpop.f32.mrb[26].mxu0  ;;  %1401 = vmatprep.subr.bf16.mxu1 %v759_v47  ;;  %v788_v9 = vpop.permute.xlu1 %787 }
 0x16a   :  { %v1314_v51 = vpop.f32.mrb[27].mxu0  ;;  %1402 = vmatpush3.bf16.msra.mxu1 %v759_v47  ;;  %v922_v45 = vpop.permute.xlu0 %921 }
 0x16b   :  { %v1315_v52 = vadd.f32 %v1314_v51, %v1313_v50  ;;  %v719_v53 = vadd.f32 %v1312_v49, %v718_v20 }
 0x16d   :  { %v722_v54 = vadd.f32 %v1315_v52, %v721_v24  ;;  %v798_v18 = vpop.permute.xlu1 %797 }
 0x16e   :  { %v932_v47 = vpop.permute.xlu0 %931 }
 0x16f   :  { %v760_v55 = vpack.c.bf16 %v722_v54, %v719_v53  ;;  %v1316_v56 = vpop.f32.mrb[28].mxu0 }
 0x170   :  { %v1317_v57 = vpop.f32.mrb[29].mxu0 }
 0x171   :  { %v1318_v58 = vadd.f32 %v1317_v57, %v1316_v56  ;;  %v1319_v59 = vpop.f32.mrb[30].mxu0  ;;  %1403 = vmatprep.subr.bf16.mxu1 %v760_v55  ;;  %v808_v31 = vpop.permute.xlu1 %807 }
 0x172   :  { %v1320_v60 = vpop.f32.mrb[31].mxu0  ;;  %1404 = vmatpush3.bf16.msra.mxu1 %v760_v55 }
 0x173   :  { %v727_v61 = vadd.f32 %v1389_v19, %v1318_v58  ;;  %v1321_v62 = vadd.f32 %v1320_v60, %v1319_v59 }
 0x175   :  { %v730_v63 = vadd.f32 %v1390_v23, %v1321_v62  ;;  %v927_v46 = vpop.permute.xlu1 %926 }
 0x177   :  { %v761_v0 = vpack.c.bf16 %v730_v63, %v727_v61  ;;  %v1483_v63 = vld [vmem:[%s1899_s7] sm:$0xff]   ;;  %s1539_s7 = smov [#allocation6]  }
 0x178   :  { %s1117_s30 = sshll.u32 %s1539_s7, 4  ;;  %s1118_s30 = int_to_ptr.vmem [resolvable:$true] %s1117_s30 }
 0x179   :  { %1405 = vmatprep.subr.bf16.mxu1 %v761_v0  ;;  %v937_v51 = vpop.permute.xlu1 %936  ;;  %s1506_s12 = scalar_lea.vmem %s1118_s30, 16  ;;  %s1510_s13 = scalar_lea.vmem %s1118_s30, 32 }
 0x17a   :  { %1406 = vmatpush3.bf16.msra.mxu1 %v761_v0  ;;  %v1018_v0 = vpop.permute.xlu0 %1017  ;;  %p1507_p8 = scmp.ne.s32.totalorder %s1118_s30, %s1506_s12  ;;  %p1511_p9 = scmp.lt.s32.totalorder %s1118_s30, %s1118_s30 }
 0x17b   :  { %p1512_p10 = scmp.lt.s32.totalorder %s1510_s13, %s1506_s12 }
 0x17d   :  { %1408 = vmatmul.mubr.bf16.vlgmr.msra.gmra.mrb[16].mxu1 %v1478_v1  ;;  %v1023_v1 = vpop.permute.xlu1 %1022  ;;  %p1513_p11 = por %p1512_p10, %p1511_p9 }
 0x17e   :  { %1411 = vmatprep.mubr.bf16.mxu1 %v1479_v3 }
 0x17f   :  { %p1514_p12 = pnand %p1513_p11, %p1507_p8 }
 0x185   :  { %1412 = vmatmul.mubr.bf16.gmra.mrb[20].mxu1 %v1480_v4  ;;  %v740_v4 = vrot.slane %v1855_v30, 4 }
 0x186   :  { %1423 = vmatprep.mubr.msk.bf16.mxu1 %vm949_vm8, %v1481_v5 }
 0x250   :  { %v1409_v10 = vpop.f32.mrb[16].mxu1 }
 0x251   :  { %v877_v11 = vadd.f32 %v1409_v10, %v783_v7  ;;  %v868_v12 = vpop.f32.mrb[17].mxu1 }
 0x252   :  { %v869_v14 = vadd.f32 %v868_v12, %v773_v6  ;;  %v1410_v15 = vpop.f32.mrb[18].mxu1 }
 0x253   :  { %v880_v16 = vadd.f32 %v1410_v15, %v788_v9  ;;  %v871_v17 = vpop.f32.mrb[19].mxu1  ;;  %v901_v20 = vmax.f32 %v877_v11, 0.0  ;;  %v741_v11 = vadd.f32 %v740_v4, %v1855_v30 }
 0x254   :  { %v872_v19 = vadd.f32 %v871_v17, %v778_v8  ;;  %v899_v22 = vmax.f32 %v869_v14, 0.0  ;;  %v1087_v14 = vpop.permute.xlu1 %1086 }
 0x255   :  { %v902_v21 = vmax.f32 %v880_v16, 0.0  ;;  %v742_v17 = vrot.slane %v741_v11, 2 }
 0x256   :  { %v900_v23 = vmax.f32 %v872_v19, 0.0 }
 0x257   :  { %v912_v24 = vpack.c.bf16 %v902_v21, %v901_v20  ;;  %v743_v21 = vadd.f32 %v742_v17, %v741_v11 }
 0x258   :  { %v911_v26 = vpack.c.bf16 %v900_v23, %v899_v22  ;;  %v1413_v27 = vpop.f32.mrb[20].mxu1 }
 0x259   :  { %v893_v28 = vadd.f32 %v1413_v27, %v803_v25  ;;  %v884_v29 = vpop.f32.mrb[21].mxu1  ;;  %v1107_v25 = vsub.s32 0, %v1615_v2 }
 0x25a   :  { %v885_v32 = vadd.f32 %v884_v29, %v793_v13  ;;  %v1414_v33 = vpop.f32.mrb[22].mxu1  ;;  %1415 = vmatprep.subr.bf16.mxu1 %v911_v26  ;;  %v1082_v13 = vpop.permute.xlu0 %1081 }
 0x25b   :  { %v896_v34 = vadd.f32 %v1414_v33, %v808_v31  ;;  %v887_v35 = vpop.f32.mrb[23].mxu1  ;;  %1416 = vmatpush3.bf16.msra.mxu1 %v911_v26  ;;  %v905_v37 = vmax.f32 %v893_v28, 0.0 }
 0x25c   :  { %v888_v36 = vadd.f32 %v887_v35, %v798_v18  ;;  %1417 = vmatprep.subr.bf16.mxu1 %v912_v24  ;;  %v903_v39 = vmax.f32 %v885_v32, 0.0 }
 0x25d   :  { %v906_v38 = vmax.f32 %v896_v34, 0.0 }
 0x25e   :  { %v904_v40 = vmax.f32 %v888_v36, 0.0  ;;  %v1103_v27 = vpop.permute.xlu0 %1102 }
 0x25f   :  { %v914_v41 = vpack.c.bf16 %v906_v38, %v905_v37  ;;  %1418 = vmatpush3.bf16.msra.mxu1 %v912_v24  ;;  %v744_v24 = vrot.slane %v743_v21, 1  ;;  %v1108_v30 = vrot.slane %v1103_v27, %v1107_v25 }
 0x260   :  { %v913_v42 = vpack.c.bf16 %v904_v40, %v903_v39 }
 0x261   :  { %v745_v28 = vadd.f32 %v744_v24, %v743_v21 }
 0x262   :  { %1419 = vmatprep.subr.bf16.mxu1 %v913_v42 }
 0x263   :  { %1420 = vmatpush3.bf16.msra.mxu1 %v913_v42 }
 0x264   :  { %1421 = vmatprep.subr.bf16.mxu1 %v914_v41 }
 0x267   :  { %1422 = vmatpush3.bf16.msra.mxu1 %v914_v41 }
 0x268   :  { %1427 = vmatprep.subr.bf16.mxu1 %v1537_v44 }
 0x26a   :  { %1424 = vmatmul.mubr.msk.bf16.vlgmr.msra.gmra.mrb[24].mxu1 %vm949_vm8, %v1482_v43 }
 0x26b   :  { %1431 = vmatprep.mubr.msk.bf16.mxu1 %vm1538_vm9, %v1537_v44 }
 0x33d   :  { %v1425_v48 = vpop.f32.mrb[24].mxu1 }
 0x33e   :  { %v999_v49 = vadd.f32 %v1425_v48, %v932_v47  ;;  %v990_v50 = vpop.f32.mrb[25].mxu1 }
 0x33f   :  { %v991_v52 = vadd.f32 %v990_v50, %v922_v45  ;;  %v1426_v53 = vpop.f32.mrb[26].mxu1 }
 0x340   :  { %v1002_v54 = vadd.f32 %v1426_v53, %v937_v51  ;;  %v993_v55 = vpop.f32.mrb[27].mxu1  ;;  %v1007_v57 = vmax.f32 %v999_v49, 0.0 }
 0x341   :  { %v994_v56 = vadd.f32 %v993_v55, %v927_v46  ;;  %v1005_v59 = vmax.f32 %v991_v52, 0.0 }
 0x342   :  { %v1008_v58 = vmax.f32 %v1002_v54, 0.0 }
 0x343   :  { %v1006_v60 = vmax.f32 %v994_v56, 0.0 }
 0x344   :  { %v1012_v61 = vpack.c.bf16 %v1008_v58, %v1007_v57 }
 0x345   :  { %v1011_v62 = vpack.c.bf16 %v1006_v60, %v1005_v59 }
 0x347   :  { %1428 = vmatpush3.bf16.msra.mxu1 %v1011_v62 }
 0x348   :  { %1429 = vmatprep.subr.bf16.mxu1 %v1537_v44 }
 0x34b   :  { %1430 = vmatpush3.bf16.msra.mxu1 %v1012_v61 }
 0x34e   :  { %1432 = vmatmul.mubr.msk.bf16.vlgmr.msra.gmra.mrb[28].mxu1 %vm1030_vm10, %v1483_v63 }
 0x421   :  { %v1068_v3 = vpop.f32.mrb[28].mxu1 }
 0x422   :  { %v1069_v5 = vadd.f32 %v1068_v3, %v1018_v0  ;;  %v1433_v6 = vpop.f32.mrb[29].mxu1 }
 0x423   :  { %v1071_v7 = vpop.f32.mrb[30].mxu1 }
 0x424   :  { %v1075_v8 = vmax.f32 %v1069_v5, 0.0  ;;  %v1072_v9 = vadd.f32 %v1071_v7, %v1023_v1  ;;  %v1434_v10 = vpop.f32.mrb[31].mxu1 }
 0x426   :  { %v1076_v12 = vmax.f32 %v1072_v9, 0.0  ;;  %v1089_v15 = vmul.f32 %v1082_v13, %v1075_v8 }
 0x428   :  { %v1090_v16 = vmul.f32 %v1087_v14, %v1076_v12 }
 0x42a   :  { %v1091_v18 = vadd.f32 %v1090_v16, %v1089_v15 }
 0x42c   :  { %v1092_v19 = vrot.slane %v1091_v18, 4 }
 0x42e   :  { %v1093_v20 = vadd.f32 %v1092_v19, %v1091_v18 }
 0x430   :  { %v1094_v22 = vrot.slane %v1093_v20, 2 }
 0x432   :  { %v1095_v23 = vadd.f32 %v1094_v22, %v1093_v20 }
 0x434   :  { %v1096_v26 = vrot.slane %v1095_v23, 1 }
 0x436   :  { %v1097_v29 = vadd.f32 %v1096_v26, %v1095_v23 }
 0x438   :  { %v1098_v31 = vadd.f32 %v1097_v29, %v745_v28 }
 0x43a   :  { %v1109_v32 = vadd.f32 %v1108_v30, %v1098_v31 }
 0x43c   :  { %1110 = vst [vmem:[#allocation6] sm:$0x1] %v1109_v32 }
 0x43d   :  { %1517 = shalt.err (!%p1514_p12)
}
 0x43e   :  { %s1518_s16 = scalar_lea.hbm %s1903_s11, 16 }
 0x43f   :  { %p1519_p13 = scmp.ne.s32.totalorder %s1903_s11, %s1518_s16  ;;  %p1522_p0 = scmp.lt.u32.totalorder %s1518_s16, %s1903_s11 }
 0x441   :  { %p1524_p1 = pnand %p1522_p0, %p1519_p13 }
 0x443   :  { %1527 = shalt.err (!%p1524_p1)
}
 0x444   :  { %1120 = dma.vmem_to_hbm [thread:$0]  %s1118_s30, 16, %s1903_s11, [#allocation5]  }
 0x445   :  { %1530 = dma.done.wait [#allocation5], 16  }
 0x446   :  { %1531 = vsyncadd [#allocation5], 4294967280 }
 0x447   :  { %1124 = vsyncpa [#allocation4], 1 }
 0x448   :  { %1125 = vsyncpa [#allocation5], 1 }

</bundles_post_ra>
